<compile_context>
chip_gen: v7x
topology: tpu7x:2x2x1
jax: 0.10.0
libtpu: 0.0.40
codegen_flags: <defaults>
</compile_context>

<pallas_src>
import functools

import jax
import jax.numpy as jnp
import numpy as np
from jax.experimental import pallas as pl
from jax.experimental.pallas import tpu as pltpu

# ---- static config (matches the module's __init__ kwargs) -------------------
NUM_MULTI_PUFS = 2
NUM_X_XORS = 3
NUM_Y_XORS = 3
NUM_STAGES = 64
Y_PIVOT = 32
BATCH = 256
BLOCK_BATCH = 128   # 2 grid steps in the demo; use 256-1024 for real batches


def _pick_batch_tile(batch):
    for tb in (512, 256, 128, 64, 32, 16, 8):
        if batch % tb == 0:
            return tb
    return batch


# ---- the Pallas kernel -------------------------------------------------------
def ipuf_kernel(x_ref, w_ref, out_ref, *, num_stages, num_multi_pufs,
                num_x_xors, num_y_xors, binary_challenge):
    S = num_stages
    M = num_multi_pufs
    x = x_ref[...]                                   # (TB, S)

    if binary_challenge:
        # fv[:, i] = prod_{j>=i} (1 - 2 x[:, j]) = (-1)^(sum_{j>=i} x[:, j]).
        # Single matmul on the otherwise-idle MXU instead of a 6-step
        # dependent lane-shift scan; exact for 0/1 challenge bits.
        row = jax.lax.broadcasted_iota(jnp.int32, (S, S), 0)
        col = jax.lax.broadcasted_iota(jnp.int32, (S, S), 1)
        upper = (row >= col).astype(jnp.float32)      # suffix-sum matrix
        counts = jnp.dot(x, upper, preferred_element_type=jnp.float32)
        parity = counts - 2.0 * jnp.floor(counts * 0.5)   # exact mod-2
        fv = 1.0 - 2.0 * parity                            # exactly +/-1
    else:
        # General suffix-product scan (any real-valued x).
        fv = 1.0 - 2.0 * x
        d = 1
        while d < S:
            shifted = jnp.concatenate(
                [fv[:, d:], jnp.ones((fv.shape[0], d), fv.dtype)], axis=-1)
            fv = fv * shifted
            d *= 2

    # One fused matmul for every arbiter chain of every multi-puf; the last
    # packed row is the fused bias (x-arbiter bias / y last-column weight).
    w = w_ref[...]                                   # (S+1, NL)
    z = (jnp.dot(fv, w[:S, :], preferred_element_type=jnp.float32)
         + w[S:S + 1, :])                            # (TB, NL)

    # Lane layout of z (element-major, multi-puf-minor):
    #   x-xor k of puf m      -> lane k*M + m                (k < Kx)
    #   y 'a' term k of puf m -> lane (Kx + k)*M + m         (k < Ky)
    #   y 'b' term k of puf m -> lane (Kx + Ky + k)*M + m    (k < Ky)
    raw_x = z[:, 0:M]
    for k in range(1, num_x_xors):
        raw_x = raw_x * z[:, k * M:(k + 1) * M]
    x_out = 1.0 - 2.0 * jax.nn.sigmoid(raw_x)        # x_output_type='sigmoid'
    abs_x = jnp.abs(x_out)

    a_off = num_x_xors * M
    b_off = (num_x_xors + num_y_xors) * M
    raw_y = None
    for k in range(num_y_xors):
        a_k = z[:, a_off + k * M:a_off + (k + 1) * M]
        b_k = z[:, b_off + k * M:b_off + (k + 1) * M]
        y_k = x_out * a_k + abs_x * b_k              # raw_y_arbiter_out[:, k]
        raw_y = y_k if raw_y is None else raw_y * y_k

    out_ref[...] = jax.nn.sigmoid(raw_y)             # y_output_type='sigmoid'


# ---- parameter packing (done ONCE, outside the per-call path) ----------------
def pack_ipuf_params(wx, bx, wy, *, y_pivot):
    """Pack all arbiter weights/biases into one (S+1, M*(Kx+2*Ky)) tensor.

    Row S is the fused bias row (weight of an implicit constant-1 feature).
    Column g*M + m holds group g of multi-puf m, with groups ordered
    [x-xor 0..Kx-1, y-'a' 0..Ky-1, y-'b' 0..Ky-1].
    """
    M, Ky, s_plus_2 = wy.shape
    S = s_plus_2 - 2
    Kx = wx.shape[0] // M
    P = y_pivot
    f32 = jnp.float32

    wx3 = wx.reshape(M, Kx, S).astype(f32)
    bx2 = bx.reshape(M, Kx).astype(f32)
    wyT = jnp.transpose(wy.astype(f32), (2, 1, 0))            # (S+2, Ky, M)

    # x-arbiter block: rows 0..S-1 weights, row S = bias.
    xblk = jnp.concatenate(
        [jnp.transpose(wx3, (2, 1, 0)), bx2.T[None, :, :]], axis=0)
    # y 'a' block (scaled by x_out): wy columns 0..P, zero elsewhere.
    ablk = jnp.concatenate(
        [wyT[:P + 1], jnp.zeros((S - P, Ky, M), f32)], axis=0)
    # y 'b' block (scaled by |x_out|): wy columns P+1..S, row S = wy[:, :, S+1].
    bblk = jnp.concatenate(
        [jnp.zeros((P, Ky, M), f32), wyT[P + 1:S + 1], wyT[S + 1:S + 2]],
        axis=0)

    packed = jnp.concatenate([xblk, ablk, bblk], axis=1)      # (S+1, Kx+2Ky, M)
    return packed.reshape(S + 1, (Kx + 2 * Ky) * M)


# ---- wrapper -----------------------------------------------------------------
def multi_interpose_puf_forward(x, w_packed, *, num_multi_pufs, num_x_xors,
                                num_y_xors, binary_challenge=True,
                                block_batch=None):
    """x: (B, S) challenge bits; w_packed: (S+1, M*(Kx+2*Ky)). Returns (M, B)."""
    B, S = x.shape
    M = num_multi_pufs
    n_lanes = (num_x_xors + 2 * num_y_xors) * M
    assert w_packed.shape == (S + 1, n_lanes)

    tb = _pick_batch_tile(B) if block_batch is None else block_batch
    assert B % tb == 0, "batch must be divisible by the batch tile"
    grid = (B // tb,)

    kernel = functools.partial(
        ipuf_kernel, num_stages=S, num_multi_pufs=M, num_x_xors=num_x_xors,
        num_y_xors=num_y_xors, binary_challenge=binary_challenge)

    out = pl.pallas_call(
        kernel,
        out_shape=jax.ShapeDtypeStruct((B, M), jnp.float32),
        grid=grid,
        in_specs=[
            pl.BlockSpec((tb, S), lambda i: (i, 0)),             # batch-tiled x
            pl.BlockSpec((S + 1, n_lanes), lambda i: (0, 0)),    # resident params
        ],
        out_specs=pl.BlockSpec((tb, M), lambda i: (i, 0)),
        compiler_params=pltpu.CompilerParams(
            dimension_semantics=("parallel",)),   # v7x: batch tiles across 2 TCs
    )(x, w_packed)

    return out.T   # (M, B): matches torch.stack(raw_y_out_list) then sigmoid


# ---- pure-JAX reference (mirrors the PyTorch forward) ------------------------
def reference_forward(x, wx, bx, wy):
    B, S = x.shape
    M, Ky, _ = wy.shape
    Kx = wx.shape[0] // M
    t = 1.0 - 2.0 * x
    fv = jnp.flip(jnp.cumprod(jnp.flip(t, -1), axis=-1), -1)
    xa = (fv @ wx.T + bx).reshape(B, M, Kx)
    raw_x = jnp.prod(xa, -1)
    x_out = 1.0 - 2.0 * jax.nn.sigmoid(raw_x)
    outs = []
    for m in range(M):
        yfv = jnp.concatenate([
            fv[:, :Y_PIVOT] * x_out[:, m:m + 1],
            (x_out[:, m] * fv[:, Y_PIVOT])[:, None],
            fv[:, Y_PIVOT:] * jnp.abs(x_out[:, m:m + 1]),
            jnp.abs(x_out[:, m:m + 1]),
        ], axis=1)
        ya = yfv @ wy[m].T
        outs.append(jax.nn.sigmoid(jnp.prod(ya, -1)))
    return jnp.stack(outs, 0)


if __name__ == "__main__":
    key = jax.random.PRNGKey(0)
    k1, k2, k3, k4 = jax.random.split(key, 4)

    # challenge bits (B, num_stages)
    x = jax.random.bernoulli(k1, 0.5, (BATCH, NUM_STAGES)).astype(jnp.float32)
    # x_arbiter_layer: Linear(num_stages -> M*Kx, bias=True)
    wx = 0.1 * jax.random.normal(
        k2, (NUM_MULTI_PUFS * NUM_X_XORS, NUM_STAGES), jnp.float32)
    bx = 0.1 * jax.random.normal(k3, (NUM_MULTI_PUFS * NUM_X_XORS,), jnp.float32)
    # y_arbiter_layer[m]: Linear(num_stages + 2 -> Ky, bias=False)
    wy = 0.1 * jax.random.normal(
        k4, (NUM_MULTI_PUFS, NUM_Y_XORS, NUM_STAGES + 2), jnp.float32)

    # Pack parameters once, hoisted out of the steady-state call path.
    w_packed = jax.block_until_ready(
        pack_ipuf_params(wx, bx, wy, y_pivot=Y_PIVOT))

    fwd = jax.jit(functools.partial(
        multi_interpose_puf_forward,
        num_multi_pufs=NUM_MULTI_PUFS, num_x_xors=NUM_X_XORS,
        num_y_xors=NUM_Y_XORS, binary_challenge=True,
        block_batch=BLOCK_BATCH))

    out = jax.block_until_ready(fwd(x, w_packed))

    ref = reference_forward(x, wx, bx, wy)
    assert out.shape == (NUM_MULTI_PUFS, BATCH)
    np.testing.assert_allclose(np.asarray(out), np.asarray(ref),
                               rtol=5e-3, atol=5e-3)
    print("KERNEL_OK")
</pallas_src>

<mosaic_0001>
module attributes {stable_mosaic.version = 11 : i64} {
  func.func @ipuf_kernel(%arg0: i32, %arg1: memref<128x64xf32, #tpu.memory_space<vmem>>, %arg2: memref<65x18xf32, #tpu.memory_space<vmem>>, %arg3: memref<128x2xf32, #tpu.memory_space<vmem>>) attributes {dimension_semantics = [#tpu.dimension_semantics<parallel>], iteration_bounds = array<i64: 2>, scalar_prefetch = 0 : i64, scratch_operands = 0 : i64, tpu.core_type = #tpu.core_type<tc>, window_params = [{transform_indices = @transform_0, window_bounds = array<i64: 128, 64>}, {pipeline_mode = #tpu.pipeline_mode<synchronous>, transform_indices = @transform_1, window_bounds = array<i64: 65, 18>}, {transform_indices = @transform_2, window_bounds = array<i64: 128, 2>}]} {
    %c0 = arith.constant 0 : index
    %c0_0 = arith.constant 0 : index
    %0 = vector.load %arg1[%c0, %c0_0] : memref<128x64xf32, #tpu.memory_space<vmem>>, vector<128x64xf32>
    %1 = tpu.iota {dimensions = array<i32: 0>} : vector<64x64xi32>
    %2 = tpu.iota {dimensions = array<i32: 1>} : vector<64x64xi32>
    %3 = arith.cmpi sge, %1, %2 : vector<64x64xi32>
    %4 = arith.extui %3 : vector<64x64xi1> to vector<64x64xi32>
    %5 = arith.sitofp %4 : vector<64x64xi32> to vector<64x64xf32>
    %cst = arith.constant dense<0.000000e+00> : vector<128x64xf32>
    %6 = tpu.matmul %0, %5, %cst {dimension_numbers = #tpu.dot_dimension_numbers<[1], [0], [0], [1], [0, 0, 1, 1], [], []>} : vector<128x64xf32>, vector<64x64xf32>, vector<128x64xf32> -> vector<128x64xf32>
    %cst_1 = arith.constant 5.000000e-01 : f32
    %7 = vector.broadcast %cst_1 : f32 to vector<128x64xf32>
    %8 = arith.mulf %6, %7 : vector<128x64xf32>
    %9 = math.floor %8 : vector<128x64xf32>
    %cst_2 = arith.constant 2.000000e+00 : f32
    %10 = vector.broadcast %cst_2 : f32 to vector<128x64xf32>
    %11 = arith.mulf %10, %9 : vector<128x64xf32>
    %12 = arith.subf %6, %11 : vector<128x64xf32>
    %cst_3 = arith.constant 2.000000e+00 : f32
    %13 = vector.broadcast %cst_3 : f32 to vector<128x64xf32>
    %14 = arith.mulf %13, %12 : vector<128x64xf32>
    %cst_4 = arith.constant 1.000000e+00 : f32
    %15 = vector.broadcast %cst_4 : f32 to vector<128x64xf32>
    %16 = arith.subf %15, %14 : vector<128x64xf32>
    %c0_5 = arith.constant 0 : index
    %c0_6 = arith.constant 0 : index
    %17 = vector.load %arg2[%c0_5, %c0_6] : memref<65x18xf32, #tpu.memory_space<vmem>>, vector<65x18xf32>
    %18 = vector.extract_strided_slice %17 {offsets = [0, 0], sizes = [64, 18], strides = [1, 1]} : vector<65x18xf32> to vector<64x18xf32>
    %cst_7 = arith.constant dense<0.000000e+00> : vector<128x18xf32>
    %19 = tpu.matmul %16, %18, %cst_7 {dimension_numbers = #tpu.dot_dimension_numbers<[1], [0], [0], [1], [0, 0, 1, 1], [], []>} : vector<128x64xf32>, vector<64x18xf32>, vector<128x18xf32> -> vector<128x18xf32>
    %20 = vector.extract_strided_slice %17 {offsets = [64, 0], sizes = [1, 18], strides = [1, 1]} : vector<65x18xf32> to vector<1x18xf32>
    %21 = vector.broadcast %20 : vector<1x18xf32> to vector<128x18xf32>
    %22 = arith.addf %19, %21 : vector<128x18xf32>
    %23 = vector.extract_strided_slice %22 {offsets = [0, 0], sizes = [128, 2], strides = [1, 1]} : vector<128x18xf32> to vector<128x2xf32>
    %24 = vector.extract_strided_slice %22 {offsets = [0, 2], sizes = [128, 2], strides = [1, 1]} : vector<128x18xf32> to vector<128x2xf32>
    %25 = arith.mulf %23, %24 : vector<128x2xf32>
    %26 = vector.extract_strided_slice %22 {offsets = [0, 4], sizes = [128, 2], strides = [1, 1]} : vector<128x18xf32> to vector<128x2xf32>
    %27 = arith.mulf %25, %26 : vector<128x2xf32>
    %28 = arith.negf %27 : vector<128x2xf32>
    %29 = math.exp %28 : vector<128x2xf32>
    %cst_8 = arith.constant 1.000000e+00 : f32
    %30 = vector.broadcast %cst_8 : f32 to vector<128x2xf32>
    %31 = arith.addf %30, %29 : vector<128x2xf32>
    %32 = arith.divf %30, %31 : vector<128x2xf32>
    %cst_9 = arith.constant 2.000000e+00 : f32
    %33 = vector.broadcast %cst_9 : f32 to vector<128x2xf32>
    %34 = arith.mulf %33, %32 : vector<128x2xf32>
    %cst_10 = arith.constant 1.000000e+00 : f32
    %35 = vector.broadcast %cst_10 : f32 to vector<128x2xf32>
    %36 = arith.subf %35, %34 : vector<128x2xf32>
    %37 = math.absf %36 : vector<128x2xf32>
    %38 = vector.extract_strided_slice %22 {offsets = [0, 6], sizes = [128, 2], strides = [1, 1]} : vector<128x18xf32> to vector<128x2xf32>
    %39 = vector.extract_strided_slice %22 {offsets = [0, 12], sizes = [128, 2], strides = [1, 1]} : vector<128x18xf32> to vector<128x2xf32>
    %40 = arith.mulf %36, %38 : vector<128x2xf32>
    %41 = arith.mulf %37, %39 : vector<128x2xf32>
    %42 = arith.addf %40, %41 : vector<128x2xf32>
    %43 = vector.extract_strided_slice %22 {offsets = [0, 8], sizes = [128, 2], strides = [1, 1]} : vector<128x18xf32> to vector<128x2xf32>
    %44 = vector.extract_strided_slice %22 {offsets = [0, 14], sizes = [128, 2], strides = [1, 1]} : vector<128x18xf32> to vector<128x2xf32>
    %45 = arith.mulf %36, %43 : vector<128x2xf32>
    %46 = arith.mulf %37, %44 : vector<128x2xf32>
    %47 = arith.addf %45, %46 : vector<128x2xf32>
    %48 = arith.mulf %42, %47 : vector<128x2xf32>
    %49 = vector.extract_strided_slice %22 {offsets = [0, 10], sizes = [128, 2], strides = [1, 1]} : vector<128x18xf32> to vector<128x2xf32>
    %50 = vector.extract_strided_slice %22 {offsets = [0, 16], sizes = [128, 2], strides = [1, 1]} : vector<128x18xf32> to vector<128x2xf32>
    %51 = arith.mulf %36, %49 : vector<128x2xf32>
    %52 = arith.mulf %37, %50 : vector<128x2xf32>
    %53 = arith.addf %51, %52 : vector<128x2xf32>
    %54 = arith.mulf %48, %53 : vector<128x2xf32>
    %55 = arith.negf %54 : vector<128x2xf32>
    %56 = math.exp %55 : vector<128x2xf32>
    %cst_11 = arith.constant 1.000000e+00 : f32
    %57 = vector.broadcast %cst_11 : f32 to vector<128x2xf32>
    %58 = arith.addf %57, %56 : vector<128x2xf32>
    %59 = arith.divf %57, %58 : vector<128x2xf32>
    %c0_12 = arith.constant 0 : index
    %c0_13 = arith.constant 0 : index
    %60 = vector.load %arg3[%c0_12, %c0_13] : memref<128x2xf32, #tpu.memory_space<vmem>>, vector<128x2xf32>
    tpu.vector_store %arg3[%c0_12, %c0_13], %59 {strides = array<i32>} : memref<128x2xf32, #tpu.memory_space<vmem>>, vector<128x2xf32>,
    return
  }
  func.func @transform_0(%arg0: i32) -> (i32, i32) {
    %c0_i32 = arith.constant 0 : i32
    %c0_i32_0 = arith.constant 0 : i32
    return %arg0, %c0_i32 : i32, i32
  }
  func.func @transform_1(%arg0: i32) -> (i32, i32) {
    %c0_i32 = arith.constant 0 : i32
    %c0_i32_0 = arith.constant 0 : i32
    %c0_i32_1 = arith.constant 0 : i32
    return %c0_i32, %c0_i32_0 : i32, i32
  }
  func.func @transform_2(%arg0: i32) -> (i32, i32) {
    %c0_i32 = arith.constant 0 : i32
    %c0_i32_0 = arith.constant 0 : i32
    return %arg0, %c0_i32 : i32, i32
  }
}

</mosaic_0001>

<bundles_post_ra>
// kernel: multi_interpose_puf_forward.1
= control target key start
LH: loop header
LB: loop body
LE: loop exit
PB: predicated region body
PF: predicated region fallthrough
CT: control target
= control target key end

     0   :  { %s2044_s9 = smov 0   ;;  %s2690_s0 = inlined_call_operand.vmem [shape: f32[256,64], index: 0, kind: input, shape index: {}]   ;;  %s2691_s1 = inlined_call_operand.vmem [shape: f32[65,18], index: 1, kind: input, shape index: {}]   ;;  %s2692_s2 = inlined_call_operand.vmem [shape: f32[256,2], index: 2, kind: output, shape index: {}]  }
   0x1 LB: > { %s1615_s10 = sadd.s32 4294967295, %s2018_s9   ;;  %p1619_p0 = scmp.ge.s32.totalorder %s2018_s9, 1  ;;  %s2018_s9 = sphi %s2044_s9, %s12_s9  }
   0x2   : > { %p113_p1 = scmp.lt.s32.totalorder %s2018_s9, 3 }
   0x4   : > { %p114_p2 = pnand %p1619_p0, %p113_p1 }
   0x5   : > { %v163_v0 = vlaneseq (!%p114_p2)  ;;  %s1620_s11 = sshll.u32 (!%p114_p2), %s1615_s10, 4  ;;  %v488_v1 = vld [vmem:[%s2691_s1] sm:$0xff] (!%p114_p2)  ;;  %v489_v2 = vld [vmem:[%s2691_s1 + $0x8] sm:$0xff] (!%p114_p2)  ;;  %vm198_vm1 = vcmask (!%p114_p2), 523264   ;;  %v2020_v12 = vmov (!%p114_p2), 1.0|1.0  }
   0x6   : > { %117 = sbr.rel (%p114_p2) target bundleno = 871 (0x367), region = 28  ;;  %p136_p3 = scmp.lt.s32.totalorder (!%p114_p2), %s1620_s11, 31  ;;  %v1851_v3 = vpack.c.bf16 (!%p114_p2), %v489_v2, %v488_v1  ;;  %v490_v30 = vld [vmem:[%s2691_s1 + $0x10] sm:$0xff] (!%p114_p2)  ;;  %v491_v31 = vld [vmem:[%s2691_s1 + $0x18] sm:$0xff] (!%p114_p2)  ;;  %v492_v33 = vld [vmem:[%s2691_s1 + $0x20] sm:$0xff] (!%p114_p2)  ;;  %vm1542_vm13 = vcmask (!%p114_p2), 15360  }
   0x7   : > { %v164_v4 = vshrl.u32 (!%p114_p2), %v163_v0, 7  ;;  %v173_v5 = vand.u32 (!%p114_p2), 127, %v163_v0  ;;  %v1855_v32 = vpack.c.bf16 (!%p114_p2), %v491_v31, %v490_v30  ;;  %v493_v34 = vld [vmem:[%s2691_s1 + $0x28] sm:$0xff] (!%p114_p2)  ;;  %v494_v36 = vld [vmem:[%s2691_s1 + $0x30] sm:$0xff] (!%p114_p2)  ;;  %v495_v37 = vld [vmem:[%s2691_s1 + $0x38] sm:$0xff] (!%p114_p2)  ;;  %s2021_s6 = smov (!%p114_p2), 124  }
   0x8   : > { %1852 = vmatprep.subr.bf16.mxu1 (!%p114_p2), %v1851_v3  ;;  %v1859_v35 = vpack.c.bf16 (!%p114_p2), %v493_v34, %v492_v33  ;;  %v1863_v38 = vpack.c.bf16 (!%p114_p2), %v495_v37, %v494_v36  ;;  %s2022_s7 = smov (!%p114_p2), 126   ;;  %s2023_s8 = smov (!%p114_p2), 122  }
   0x9   : > { %v165_v6 = vadd.s32 (!%p114_p2), 8, %v164_v4  ;;  %vm174_vm0 = vcmp.ge.s32.totalorder (!%p114_p2), %v164_v4, %v173_v5  ;;  %v166_v7 = vadd.s32 (!%p114_p2), 16, %v164_v4  ;;  %v167_v8 = vadd.s32 (!%p114_p2), 24, %v164_v4  ;;  %1854 = vmatpush3.bf16.msra.mxu1 (!%p114_p2), %v1851_v3  ;;  %s2024_s10 = smov (!%p114_p2), 116   ;;  %s2025_s12 = smov (!%p114_p2), 120  }
   0xa   : > { %v168_v9 = vadd.s32 (!%p114_p2), 32, %v164_v4  ;;  %v169_v10 = vadd.s32 (!%p114_p2), 40, %v164_v4  ;;  %v170_v13 = vadd.s32 (!%p114_p2), 48, %v164_v4  ;;  %v171_v14 = vadd.s32 (!%p114_p2), 56, %v164_v4  ;;  %1856 = vmatprep.subr.bf16.mxu1 (!%p114_p2), %v1855_v32  ;;  %s2026_s13 = smov (!%p114_p2), 114   ;;  %s2027_s14 = smov (!%p114_p2), 118  }
   0xb   : > { %vm175_vm2 = vcmp.ge.s32.totalorder (!%p114_p2), %v165_v6, %v173_v5  ;;  %vm176_vm3 = vcmp.ge.s32.totalorder (!%p114_p2), %v166_v7, %v173_v5  ;;  %vm177_vm4 = vcmp.ge.s32.totalorder (!%p114_p2), %v167_v8, %v173_v5  ;;  %s2028_s15 = smov (!%p114_p2), 112  }
   0xc   : > { %vm1835_vm5 = vmpackc.low (!%p114_p2), %vm175_vm2, %vm174_vm0  ;;  %vm178_vm7 = vcmp.ge.s32.totalorder (!%p114_p2), %v168_v9, %v173_v5  ;;  %vm179_vm8 = vcmp.ge.s32.totalorder (!%p114_p2), %v169_v10, %v173_v5  ;;  %vm180_vm10 = vcmp.ge.s32.totalorder (!%p114_p2), %v170_v13, %v173_v5  ;;  %vm181_vm11 = vcmp.ge.s32.totalorder (!%p114_p2), %v171_v14, %v173_v5 }
   0xd   : > { %s2694_s11 = smov (!%p136_p3, %s1620_s11), 31  ;;  %1836 = vmatprep.subr.msk.bf16.mxu0 %vm1835_vm5, %v2020_v12  ;;  %vm1839_vm6 = vmpackc.low %vm177_vm4, %vm176_vm3  ;;  %1858 = vmatpush3.bf16.msra.mxu1 %v1855_v32 }
   0xe   : > { %s1621_s16 = sshll.u32 %s2694_s11, 3  ;;  %1838 = vmatpush3.bf16.msk.msra.mxu0 %vm1835_vm5, %v2020_v12  ;;  %vm1843_vm9 = vmpackc.low %vm179_vm8, %vm178_vm7  ;;  %1860 = vmatprep.subr.bf16.mxu1 %v1859_v35 }
   0xf   : > { %s2066_s19 = scalar_lea.vmem %s2690_s0, %s1621_s16  ;;  %1840 = vmatprep.subr.msk.bf16.mxu0 %vm1839_vm6, %v2020_v12  ;;  %vm1847_vm12 = vmpackc.low %vm181_vm11, %vm180_vm10 }
  0x10   : > { %v147_v11 = vld [vmem:[%s2066_s19] sm:$0xff]  ;;  %v148_v15 = vld [vmem:[%s2066_s19 + $0x8] sm:$0xff]  ;;  %v149_v16 = vld [vmem:[%s2066_s19 + $0x10] sm:$0xff] }
  0x11   : > { %1771 = vmatprep.mubr.msk.f32.mxu0 %vm198_vm1, %v147_v11  ;;  %v150_v17 = vld [vmem:[%s2066_s19 + $0x18] sm:$0xff]  ;;  %v151_v18 = vld [vmem:[%s2066_s19 + $0x20] sm:$0xff]  ;;  %v152_v19 = vld [vmem:[%s2066_s19 + $0x28] sm:$0xff]  ;;  %1862 = vmatpush3.bf16.msra.mxu1 %v1859_v35 }
  0x12   : > { %1842 = vmatpush3.bf16.msk.msra.mxu0 %vm1839_vm6, %v2020_v12  ;;  %v153_v20 = vld [vmem:[%s2066_s19 + $0x30] sm:$0xff]  ;;  %v154_v21 = vld [vmem:[%s2066_s19 + $0x38] sm:$0xff]  ;;  %v155_v22 = vld [vmem:[%s2066_s19 + $0x40] sm:$0xff]  ;;  %1864 = vmatprep.subr.bf16.mxu1 %v1863_v38 }
  0x13   : > { %1844 = vmatprep.subr.msk.bf16.mxu0 %vm1843_vm9, %v2020_v12  ;;  %v156_v23 = vld [vmem:[%s2066_s19 + $0x48] sm:$0xff]  ;;  %v157_v24 = vld [vmem:[%s2066_s19 + $0x50] sm:$0xff]  ;;  %v158_v25 = vld [vmem:[%s2066_s19 + $0x58] sm:$0xff] }
  0x14   : > { %v159_v26 = vld [vmem:[%s2066_s19 + $0x60] sm:$0xff]  ;;  %v160_v27 = vld [vmem:[%s2066_s19 + $0x68] sm:$0xff]  ;;  %v161_v28 = vld [vmem:[%s2066_s19 + $0x70] sm:$0xff] }
  0x15   : > { %v162_v29 = vld [vmem:[%s2066_s19 + $0x78] sm:$0xff]  ;;  %1866 = vmatpush3.bf16.msra.mxu1 %v1863_v38  ;;  %s2418_s19 = scalar_lea.vmem %s2692_s2, %s1621_s16 }
  0x16   : > { %1846 = vmatpush3.bf16.msk.msra.mxu0 %vm1843_vm9, %v2020_v12 }
  0x17   : > { %1848 = vmatprep.subr.msk.bf16.mxu0 %vm1847_vm12, %v2020_v12 }
  0x1a   : > { %1850 = vmatpush3.bf16.msk.msra.mxu0 %vm1847_vm12, %v2020_v12 }
  0x1d   : > { %1772 = vmatmul.mubr.msk.f32.vlgmr.msra.gmra.mrb[0].mxu0 %vm198_vm1, %v148_v15 }
  0x1e   : > { %1774 = vmatprep.mubr.msk.f32.mxu0 %vm198_vm1, %v149_v16 }
  0x21   : > { %1775 = vmatmul.mubr.msk.f32.gmra.mrb[2].mxu0 %vm198_vm1, %v150_v17 }
  0x22   : > { %1777 = vmatprep.mubr.msk.f32.mxu0 %vm198_vm1, %v151_v18 }
  0x25   : > { %1778 = vmatmul.mubr.msk.f32.gmra.mrb[4].mxu0 %vm198_vm1, %v152_v19 }
  0x26   : > { %1780 = vmatprep.mubr.msk.f32.mxu0 %vm198_vm1, %v153_v20 }
  0x29   : > { %1781 = vmatmul.mubr.msk.f32.gmra.mrb[6].mxu0 %vm198_vm1, %v154_v21 }
  0x2a   : > { %1783 = vmatprep.mubr.msk.f32.mxu0 %vm198_vm1, %v155_v22 }
  0x2d   : > { %1784 = vmatmul.mubr.msk.f32.gmra.mrb[8].mxu0 %vm198_vm1, %v156_v23 }
  0x2e   : > { %1786 = vmatprep.mubr.msk.f32.mxu0 %vm198_vm1, %v157_v24 }
  0x31   : > { %1787 = vmatmul.mubr.msk.f32.gmra.mrb[10].mxu0 %vm198_vm1, %v158_v25 }
  0x32   : > { %1789 = vmatprep.mubr.msk.f32.mxu0 %vm198_vm1, %v159_v26 }
  0x35   : > { %1790 = vmatmul.mubr.msk.f32.gmra.mrb[12].mxu0 %vm198_vm1, %v160_v27 }
  0x36   : > { %1792 = vmatprep.mubr.msk.f32.mxu0 %vm198_vm1, %v161_v28 }
  0x39   : > { %1793 = vmatmul.mubr.msk.f32.gmra.mrb[14].mxu0 %vm198_vm1, %v162_v29 }
  0xf0   : > { %v1773_v39 = vpop.f32.mrb[0].mxu0 }
  0xf1   : > { %v393_v40 = vmul.f32 0.5, %v1773_v39  ;;  %v313_v41 = vpop.f32.mrb[1].mxu0 }
  0xf2   : > { %v392_v42 = vmul.f32 0.5, %v313_v41 }
  0xf3   : > { %v409_v43 = vfloor.f32 %v393_v40 }
  0xf4   : > { %v408_v44 = vfloor.f32 %v392_v42  ;;  %v1776_v45 = vpop.f32.mrb[2].mxu0 }
  0xf5   : > { %v425_v46 = vmul.f32 2.0, %v409_v43  ;;  %v395_v47 = vmul.f32 0.5, %v1776_v45  ;;  %v323_v48 = vpop.f32.mrb[3].mxu0 }
  0xf6   : > { %v424_v49 = vmul.f32 2.0, %v408_v44  ;;  %v394_v50 = vmul.f32 0.5, %v323_v48 }
  0xf7   : > { %v441_v51 = vsub.f32 %v1773_v39, %v425_v46  ;;  %v411_v52 = vfloor.f32 %v395_v47 }
  0xf8   : > { %v440_v53 = vsub.f32 %v313_v41, %v424_v49  ;;  %v410_v54 = vfloor.f32 %v394_v50  ;;  %v1779_v55 = vpop.f32.mrb[4].mxu0 }
  0xf9   : > { %v457_v56 = vmul.f32 2.0, %v441_v51  ;;  %v427_v57 = vmul.f32 2.0, %v411_v52  ;;  %v397_v58 = vmul.f32 0.5, %v1779_v55  ;;  %v333_v59 = vpop.f32.mrb[5].mxu0 }
  0xfa   : > { %v456_v60 = vmul.f32 2.0, %v440_v53  ;;  %v426_v61 = vmul.f32 2.0, %v410_v54  ;;  %v396_v62 = vmul.f32 0.5, %v333_v59 }
  0xfb   : > { %v443_v63 = vsub.f32 %v1776_v45, %v427_v57  ;;  %v413_v0 = vfloor.f32 %v397_v58  ;;  %v473_v5 = vsub.f32 1.0, %v457_v56 }
  0xfc   : > { %v472_v1 = vsub.f32 1.0, %v456_v60  ;;  %v442_v2 = vsub.f32 %v323_v48, %v426_v61  ;;  %v412_v3 = vfloor.f32 %v396_v62  ;;  %v1782_v4 = vpop.f32.mrb[6].mxu0 }
  0xfd   : > { %v459_v6 = vmul.f32 2.0, %v443_v63  ;;  %v429_v7 = vmul.f32 2.0, %v413_v0  ;;  %v399_v8 = vmul.f32 0.5, %v1782_v4  ;;  %v343_v9 = vpop.f32.mrb[7].mxu0 }
  0xfe   : > { %1811 = vmatprep.mubr.msk.f32.mxu1 %vm198_vm1, %v472_v1  ;;  %v458_v10 = vmul.f32 2.0, %v442_v2  ;;  %v428_v11 = vmul.f32 2.0, %v412_v3  ;;  %v398_v12 = vmul.f32 0.5, %v343_v9 }
  0xff   : > { %1812 = vmatmul.mubr.msk.f32.vlgmr.msra.gmra.mrb[0].mxu1 %vm198_vm1, %v473_v5  ;;  %v475_v13 = vsub.f32 1.0, %v459_v6  ;;  %v445_v14 = vsub.f32 %v1779_v55, %v429_v7  ;;  %v415_v15 = vfloor.f32 %v399_v8 }
 0x100   : > { %v474_v16 = vsub.f32 1.0, %v458_v10  ;;  %v444_v17 = vsub.f32 %v333_v59, %v428_v11  ;;  %v414_v18 = vfloor.f32 %v398_v12  ;;  %v1785_v19 = vpop.f32.mrb[8].mxu0 }
 0x101   : > { %v461_v20 = vmul.f32 2.0, %v445_v14  ;;  %v431_v21 = vmul.f32 2.0, %v415_v15  ;;  %v401_v22 = vmul.f32 0.5, %v1785_v19  ;;  %v353_v23 = vpop.f32.mrb[9].mxu0 }
 0x102   : > { %1814 = vmatprep.mubr.msk.f32.mxu1 %vm198_vm1, %v474_v16  ;;  %v460_v24 = vmul.f32 2.0, %v444_v17  ;;  %v430_v25 = vmul.f32 2.0, %v414_v18  ;;  %v400_v26 = vmul.f32 0.5, %v353_v23 }
 0x103   : > { %1815 = vmatmul.mubr.msk.f32.gmra.mrb[2].mxu1 %vm198_vm1, %v475_v13  ;;  %v477_v27 = vsub.f32 1.0, %v461_v20  ;;  %v447_v28 = vsub.f32 %v1782_v4, %v431_v21  ;;  %v417_v29 = vfloor.f32 %v401_v22 }
 0x104   : > { %v476_v30 = vsub.f32 1.0, %v460_v24  ;;  %v446_v31 = vsub.f32 %v343_v9, %v430_v25  ;;  %v416_v32 = vfloor.f32 %v400_v26  ;;  %v1788_v33 = vpop.f32.mrb[10].mxu0 }
 0x105   : > { %v463_v34 = vmul.f32 2.0, %v447_v28  ;;  %v433_v35 = vmul.f32 2.0, %v417_v29  ;;  %v403_v36 = vmul.f32 0.5, %v1788_v33  ;;  %v363_v37 = vpop.f32.mrb[11].mxu0 }
 0x106   : > { %1817 = vmatprep.mubr.msk.f32.mxu1 %vm198_vm1, %v476_v30  ;;  %v462_v38 = vmul.f32 2.0, %v446_v31  ;;  %v432_v39 = vmul.f32 2.0, %v416_v32  ;;  %v402_v40 = vmul.f32 0.5, %v363_v37 }
 0x107   : > { %1818 = vmatmul.mubr.msk.f32.gmra.mrb[4].mxu1 %vm198_vm1, %v477_v27  ;;  %v479_v41 = vsub.f32 1.0, %v463_v34  ;;  %v449_v42 = vsub.f32 %v1785_v19, %v433_v35  ;;  %v419_v43 = vfloor.f32 %v403_v36 }
 0x108   : > { %v478_v44 = vsub.f32 1.0, %v462_v38  ;;  %v448_v45 = vsub.f32 %v353_v23, %v432_v39  ;;  %v418_v46 = vfloor.f32 %v402_v40  ;;  %v1791_v47 = vpop.f32.mrb[12].mxu0  ;;  %v2137_v23 = vld [vmem:[%s2691_s1 + $0x40] ss:$0 sm:$0xff] }
 0x109   : > { %v465_v48 = vmul.f32 2.0, %v449_v42  ;;  %v435_v49 = vmul.f32 2.0, %v419_v43  ;;  %v405_v50 = vmul.f32 0.5, %v1791_v47  ;;  %v373_v51 = vpop.f32.mrb[13].mxu0 }
 0x10a   : > { %1820 = vmatprep.mubr.msk.f32.mxu1 %vm198_vm1, %v478_v44  ;;  %v464_v52 = vmul.f32 2.0, %v448_v45  ;;  %v434_v53 = vmul.f32 2.0, %v418_v46  ;;  %v404_v54 = vmul.f32 0.5, %v373_v51 }
 0x10b   : > { %1821 = vmatmul.mubr.msk.f32.gmra.mrb[6].mxu1 %vm198_vm1, %v479_v41  ;;  %v481_v55 = vsub.f32 1.0, %v465_v48  ;;  %v451_v56 = vsub.f32 %v1788_v33, %v435_v49  ;;  %v421_v57 = vfloor.f32 %v405_v50 }
 0x10c   : > { %v480_v58 = vsub.f32 1.0, %v464_v52  ;;  %v450_v59 = vsub.f32 %v363_v37, %v434_v53  ;;  %v420_v60 = vfloor.f32 %v404_v54  ;;  %v1794_v61 = vpop.f32.mrb[14].mxu0 }
 0x10d   : > { %v467_v62 = vmul.f32 2.0, %v451_v56  ;;  %v437_v63 = vmul.f32 2.0, %v421_v57  ;;  %v407_v0 = vmul.f32 0.5, %v1794_v61  ;;  %v383_v1 = vpop.f32.mrb[15].mxu0 }
 0x10e   : > { %1823 = vmatprep.mubr.msk.f32.mxu1 %vm198_vm1, %v480_v58  ;;  %v466_v2 = vmul.f32 2.0, %v450_v59  ;;  %v436_v3 = vmul.f32 2.0, %v420_v60  ;;  %v406_v4 = vmul.f32 0.5, %v383_v1 }
 0x10f   : > { %1824 = vmatmul.mubr.msk.f32.gmra.mrb[8].mxu1 %vm198_vm1, %v481_v55  ;;  %v483_v5 = vsub.f32 1.0, %v467_v62  ;;  %v453_v6 = vsub.f32 %v1791_v47, %v437_v63  ;;  %v423_v7 = vfloor.f32 %v407_v0 }
 0x110   : > { %v482_v8 = vsub.f32 1.0, %v466_v2  ;;  %v452_v9 = vsub.f32 %v373_v51, %v436_v3  ;;  %v422_v10 = vfloor.f32 %v406_v4 }
 0x111   : > { %v469_v11 = vmul.f32 2.0, %v453_v6  ;;  %v439_v12 = vmul.f32 2.0, %v423_v7 }
 0x112   : > { %1826 = vmatprep.mubr.msk.f32.mxu1 %vm198_vm1, %v482_v8  ;;  %v468_v13 = vmul.f32 2.0, %v452_v9  ;;  %v438_v14 = vmul.f32 2.0, %v422_v10 }
 0x113   : > { %1827 = vmatmul.mubr.msk.f32.gmra.mrb[10].mxu1 %vm198_vm1, %v483_v5  ;;  %v485_v15 = vsub.f32 1.0, %v469_v11  ;;  %v455_v16 = vsub.f32 %v1794_v61, %v439_v12 }
 0x114   : > { %v484_v17 = vsub.f32 1.0, %v468_v13  ;;  %v454_v18 = vsub.f32 %v383_v1, %v438_v14 }
 0x115   : > { %v471_v19 = vmul.f32 2.0, %v455_v16 }
 0x116   : > { %1829 = vmatprep.mubr.msk.f32.mxu1 %vm198_vm1, %v484_v17  ;;  %v470_v20 = vmul.f32 2.0, %v454_v18 }
 0x117   : > { %1830 = vmatmul.mubr.msk.f32.gmra.mrb[12].mxu1 %vm198_vm1, %v485_v15  ;;  %v487_v21 = vsub.f32 1.0, %v471_v19 }
 0x118   : > { %v486_v22 = vsub.f32 1.0, %v470_v20 }
 0x11a   : > { %1832 = vmatprep.mubr.msk.f32.mxu1 %vm198_vm1, %v486_v22 }
 0x11b   : > { %1833 = vmatmul.mubr.msk.f32.gmra.mrb[14].mxu1 %vm198_vm1, %v487_v21 }
 0x1d2   : > { %v1813_v24 = vpop.f32.mrb[0].mxu1 }
 0x1d3   : > { %v2140_v25 = vadd.f32 %v1813_v24, %v2137_v23  ;;  %v615_v26 = vpop.f32.mrb[1].mxu1 }
 0x1d4   : > { %v2147_v28 = vadd.f32 %v2137_v23, %v615_v26 }
 0x1d5   : > { %776 = vrot.lane.b32.xlu1 %v2140_v25, %s2021_s6  ;;  %712 = vrot.lane.b32.xlu0 %v2140_v25, %s2022_s7 }
 0x1d6   : > { %v1816_v27 = vpop.f32.mrb[2].mxu1 }
 0x1d7   : > { %v625_v29 = vpop.f32.mrb[3].mxu1  ;;  %v2182_v38 = vadd.f32 %v1816_v27, %v2137_v23 }
 0x1d8   : > { %v2193_v39 = vadd.f32 %v2137_v23, %v625_v29 }
 0x1d9   : > { %984 = vrot.lane.b32.xlu1 %v2140_v25, %s2023_s8  ;;  %710 = vrot.lane.b32.xlu0 %v2147_v28, %s2022_s7 }
 0x1da   : > { %v1819_v30 = vpop.f32.mrb[4].mxu1 }
 0x1db   : > { %v635_v31 = vpop.f32.mrb[5].mxu1  ;;  %v2228_v42 = vadd.f32 %v1819_v30, %v2137_v23 }
 0x1dc   : > { %v2231_v43 = vadd.f32 %v2137_v23, %v635_v31 }
 0x1dd   : > { %1048 = vrot.lane.b32.xlu1 %v2140_v25, %s2024_s10  ;;  %774 = vrot.lane.b32.xlu0 %v2147_v28, %s2021_s6 }
 0x1de   : > { %v1822_v32 = vpop.f32.mrb[6].mxu1 }
 0x1df   : > { %v645_v33 = vpop.f32.mrb[7].mxu1  ;;  %v2270_v46 = vadd.f32 %v1822_v32, %v2137_v23 }
 0x1e0   : > { %v2273_v47 = vadd.f32 %v2137_v23, %v645_v33 }
 0x1e1   : > { %1128 = vrot.lane.b32.xlu1 %v2140_v25, %s2025_s12  ;;  %982 = vrot.lane.b32.xlu0 %v2147_v28, %s2023_s8 }
 0x1e2   : > { %v2161_v34 = vpop.f32.mrb[8].mxu1 }
 0x1e3   : > { %v2163_v35 = vpop.f32.mrb[9].mxu1  ;;  %v2311_v60 = vadd.f32 %v2161_v34, %v2137_v23 }
 0x1e4   : > { %v2315_v61 = vadd.f32 %v2137_v23, %v2163_v35 }
 0x1e5   : > { %1192 = vrot.lane.b32.xlu1 %v2140_v25, %s2026_s13  ;;  %1046 = vrot.lane.b32.xlu0 %v2147_v28, %s2024_s10 }
 0x1e6   : > { %v2169_v36 = vpop.f32.mrb[10].mxu1 }
 0x1e7   : > { %v2171_v37 = vpop.f32.mrb[11].mxu1  ;;  %v2352_v35 = vadd.f32 %v2169_v36, %v2137_v23 }
 0x1e9   : > { %1288 = vrot.lane.b32.xlu1 %v2140_v25, %s2027_s14  ;;  %1126 = vrot.lane.b32.xlu0 %v2147_v28, %s2025_s12 }
 0x1ea   : > { %v2207_v40 = vpop.f32.mrb[12].mxu1 }
 0x1eb   : > { %v2209_v41 = vpop.f32.mrb[13].mxu1 }
 0x1ed   : > { %1352 = vrot.lane.b32.xlu1 %v2140_v25, %s2028_s15  ;;  %1190 = vrot.lane.b32.xlu0 %v2147_v28, %s2026_s13 }
 0x1ee   : > { %v2245_v44 = vpop.f32.mrb[14].mxu1 }
 0x1ef   : > { %v2247_v45 = vpop.f32.mrb[15].mxu1 }
 0x1f1   : > { %1286 = vrot.lane.b32.xlu0 %v2147_v28, %s2027_s14  ;;  %716 = vrot.lane.b32.xlu1 %v2182_v38, %s2022_s7 }
 0x1f5   : > { %1350 = vrot.lane.b32.xlu0 %v2147_v28, %s2028_s15  ;;  %780 = vrot.lane.b32.xlu1 %v2182_v38, %s2021_s6 }
 0x1f9   : > { %988 = vrot.lane.b32.xlu1 %v2182_v38, %s2023_s8  ;;  %778 = vrot.lane.b32.xlu0 %v2193_v39, %s2021_s6 }
 0x1fd   : > { %1052 = vrot.lane.b32.xlu1 %v2182_v38, %s2024_s10  ;;  %986 = vrot.lane.b32.xlu0 %v2193_v39, %s2023_s8 }
 0x201   : > { %1132 = vrot.lane.b32.xlu1 %v2182_v38, %s2025_s12  ;;  %1050 = vrot.lane.b32.xlu0 %v2193_v39, %s2024_s10 }
 0x205   : > { %1196 = vrot.lane.b32.xlu1 %v2182_v38, %s2026_s13  ;;  %1130 = vrot.lane.b32.xlu0 %v2193_v39, %s2025_s12 }
 0x209   : > { %1292 = vrot.lane.b32.xlu1 %v2182_v38, %s2027_s14  ;;  %1194 = vrot.lane.b32.xlu0 %v2193_v39, %s2026_s13 }
 0x20d   : > { %1356 = vrot.lane.b32.xlu1 %v2182_v38, %s2028_s15  ;;  %1290 = vrot.lane.b32.xlu0 %v2193_v39, %s2027_s14 }
 0x211   : > { %1354 = vrot.lane.b32.xlu0 %v2193_v39, %s2028_s15  ;;  %714 = vrot.lane.b32.xlu1 %v2193_v39, %s2022_s7 }
 0x215   : > { %720 = vrot.lane.b32.xlu1 %v2228_v42, %s2022_s7  ;;  %718 = vrot.lane.b32.xlu0 %v2231_v43, %s2022_s7 }
 0x219   : > { %784 = vrot.lane.b32.xlu1 %v2228_v42, %s2021_s6  ;;  %782 = vrot.lane.b32.xlu0 %v2231_v43, %s2021_s6 }
 0x21d   : > { %992 = vrot.lane.b32.xlu1 %v2228_v42, %s2023_s8  ;;  %990 = vrot.lane.b32.xlu0 %v2231_v43, %s2023_s8 }
 0x221   : > { %1056 = vrot.lane.b32.xlu1 %v2228_v42, %s2024_s10  ;;  %1054 = vrot.lane.b32.xlu0 %v2231_v43, %s2024_s10 }
 0x225   : > { %1136 = vrot.lane.b32.xlu1 %v2228_v42, %s2025_s12  ;;  %1134 = vrot.lane.b32.xlu0 %v2231_v43, %s2025_s12 }
 0x229   : > { %1200 = vrot.lane.b32.xlu1 %v2228_v42, %s2026_s13  ;;  %1198 = vrot.lane.b32.xlu0 %v2231_v43, %s2026_s13 }
 0x22d   : > { %1296 = vrot.lane.b32.xlu1 %v2228_v42, %s2027_s14  ;;  %1294 = vrot.lane.b32.xlu0 %v2231_v43, %s2027_s14 }
 0x231   : > { %1360 = vrot.lane.b32.xlu1 %v2228_v42, %s2028_s15  ;;  %1358 = vrot.lane.b32.xlu0 %v2231_v43, %s2028_s15 }
 0x235   : > { %724 = vrot.lane.b32.xlu1 %v2270_v46, %s2022_s7  ;;  %722 = vrot.lane.b32.xlu0 %v2273_v47, %s2022_s7 }
 0x239   : > { %788 = vrot.lane.b32.xlu1 %v2270_v46, %s2021_s6  ;;  %786 = vrot.lane.b32.xlu0 %v2273_v47, %s2021_s6 }
 0x23d   : > { %996 = vrot.lane.b32.xlu1 %v2270_v46, %s2023_s8  ;;  %994 = vrot.lane.b32.xlu0 %v2273_v47, %s2023_s8 }
 0x241   : > { %1060 = vrot.lane.b32.xlu1 %v2270_v46, %s2024_s10  ;;  %1058 = vrot.lane.b32.xlu0 %v2273_v47, %s2024_s10 }
 0x245   : > { %1140 = vrot.lane.b32.xlu1 %v2270_v46, %s2025_s12  ;;  %1138 = vrot.lane.b32.xlu0 %v2273_v47, %s2025_s12 }
 0x247   : > { %v777_v48 = vpop.permute.xlu1 %776  ;;  %v713_v49 = vpop.permute.xlu0 %712 }
 0x248   : > { %v759_v50 = vmul.f32 %v713_v49, %v2140_v25 }
 0x249   : > { %1204 = vrot.lane.b32.xlu1 %v2270_v46, %s2026_s13  ;;  %1202 = vrot.lane.b32.xlu0 %v2273_v47, %s2026_s13 }
 0x24a   : > { %v823_v51 = vmul.f32 %v777_v48, %v759_v50 }
 0x24b   : > { %v985_v52 = vpop.permute.xlu1 %984  ;;  %v711_v53 = vpop.permute.xlu0 %710 }
 0x24c   : > { %v1674_v54 = vmul.f32 -1.442695, %v823_v51  ;;  %v758_v55 = vmul.f32 %v711_v53, %v2147_v28 }
 0x24d   : > { %1300 = vrot.lane.b32.xlu1 %v2270_v46, %s2027_s14  ;;  %1298 = vrot.lane.b32.xlu0 %v2273_v47, %s2027_s14 }
 0x24e   : > { %1884 = vpow2.f32 %v1674_v54 }
 0x24f   : > { %v1049_v56 = vpop.permute.xlu1 %1048  ;;  %v775_v57 = vpop.permute.xlu0 %774 }
 0x250   : > { %v822_v58 = vmul.f32 %v775_v57, %v758_v55 }
 0x251   : > { %1364 = vrot.lane.b32.xlu1 %v2270_v46, %s2028_s15  ;;  %1362 = vrot.lane.b32.xlu0 %v2273_v47, %s2028_s15 }
 0x252   : > { %v1673_v59 = vmul.f32 -1.442695, %v822_v58 }
 0x253   : > { %v1129_v62 = vpop.permute.xlu1 %1128  ;;  %v983_v63 = vpop.permute.xlu0 %982 }
 0x254   : > { %1886 = vpow2.f32 %v1673_v59 }
 0x255   : > { %728 = vrot.lane.b32.xlu1 %v2311_v60, %s2022_s7  ;;  %726 = vrot.lane.b32.xlu0 %v2315_v61, %s2022_s7 }
 0x257   : > { %v1193_v0 = vpop.permute.xlu1 %1192  ;;  %v1047_v1 = vpop.permute.xlu0 %1046 }
 0x258   : > { %v1885_v2 = vpop.eup %1884 }
 0x259   : > { %v887_v3 = vadd.f32 1.0, %v1885_v2  ;;  %792 = vrot.lane.b32.xlu1 %v2311_v60, %s2021_s6  ;;  %790 = vrot.lane.b32.xlu0 %v2315_v61, %s2021_s6 }
 0x25b   : > { %1888 = vrcp.f32 %v887_v3  ;;  %v1289_v4 = vpop.permute.xlu1 %1288  ;;  %v1127_v5 = vpop.permute.xlu0 %1126 }
 0x25d   : > { %1000 = vrot.lane.b32.xlu1 %v2311_v60, %s2023_s8  ;;  %998 = vrot.lane.b32.xlu0 %v2315_v61, %s2023_s8 }
 0x25e   : > { %v1887_v6 = vpop.eup %1886 }
 0x25f   : > { %v886_v7 = vadd.f32 1.0, %v1887_v6  ;;  %v1353_v8 = vpop.permute.xlu1 %1352  ;;  %v1191_v9 = vpop.permute.xlu0 %1190 }
 0x261   : > { %1890 = vrcp.f32 %v886_v7  ;;  %1064 = vrot.lane.b32.xlu1 %v2311_v60, %s2024_s10  ;;  %1062 = vrot.lane.b32.xlu0 %v2315_v61, %s2024_s10 }
 0x263   : > { %v1287_v10 = vpop.permute.xlu0 %1286  ;;  %v717_v11 = vpop.permute.xlu1 %716 }
 0x264   : > { %v761_v14 = vmul.f32 %v717_v11, %v2182_v38  ;;  %v2356_v38 = vadd.f32 %v2137_v23, %v2171_v37 }
 0x265   : > { %v1889_v12 = vpop.eup %1888  ;;  %1144 = vrot.lane.b32.xlu1 %v2311_v60, %s2025_s12  ;;  %1142 = vrot.lane.b32.xlu0 %v2315_v61, %s2025_s12 }
 0x266   : > { %v935_v13 = vmul.f32 2.0, %v1889_v12 }
 0x267   : > { %v1351_v15 = vpop.permute.xlu0 %1350  ;;  %v781_v16 = vpop.permute.xlu1 %780 }
 0x268   : > { %v951_v17 = vsub.f32 1.0, %v935_v13  ;;  %v825_v18 = vmul.f32 %v781_v16, %v761_v14 }
 0x269   : > { %1208 = vrot.lane.b32.xlu1 %v2311_v60, %s2026_s13  ;;  %1206 = vrot.lane.b32.xlu0 %v2315_v61, %s2026_s13 }
 0x26a   : > { %v967_v19 = vand.u32 2147483647, %v951_v17  ;;  %v1031_v21 = vmul.f32 %v985_v52, %v951_v17  ;;  %v1175_v22 = vmul.f32 %v1129_v62, %v951_v17  ;;  %v1676_v24 = vmul.f32 -1.442695, %v825_v18 }
 0x26b   : > { %v1891_v20 = vpop.eup %1890  ;;  %v2342_v25 = vpop.permute.xlu1 %988  ;;  %v1335_v34 = vmul.f32 %v1289_v4, %v951_v17 }
 0x26c   : > { %v2344_v26 = vpop.permute.xlu0 %778  ;;  %v1095_v27 = vmul.f32 %v1049_v56, %v967_v19  ;;  %v934_v28 = vmul.f32 2.0, %v1891_v20  ;;  %v1239_v29 = vmul.f32 %v1193_v0, %v967_v19  ;;  %v1399_v30 = vmul.f32 %v1353_v8, %v967_v19 }
 0x26d   : > { %1892 = vpow2.f32 %v1676_v24  ;;  %1304 = vrot.lane.b32.xlu1 %v2311_v60, %s2027_s14  ;;  %1302 = vrot.lane.b32.xlu0 %v2315_v61, %s2027_s14 }
 0x26e   : > { %v1111_v31 = vadd.f32 %v1095_v27, %v1031_v21  ;;  %v950_v32 = vsub.f32 1.0, %v934_v28  ;;  %v1255_v33 = vadd.f32 %v1239_v29, %v1175_v22  ;;  %v1415_v52 = vadd.f32 %v1399_v30, %v1335_v34 }
 0x26f   : > { %v2358_v48 = vpop.permute.xlu1 %1052 }
 0x270   : > { %v2360_v49 = vpop.permute.xlu0 %986  ;;  %v1271_v50 = vmul.f32 %v1255_v33, %v1111_v31  ;;  %v966_v51 = vand.u32 2147483647, %v950_v32  ;;  %v1030_v53 = vmul.f32 %v983_v63, %v950_v32  ;;  %v1174_v54 = vmul.f32 %v1127_v5, %v950_v32 }
 0x271   : > { %732 = vrot.lane.b32.xlu1 %v2352_v35, %s2022_s7  ;;  %730 = vrot.lane.b32.xlu0 %v2356_v38, %s2022_s7  ;;  %v1334_v2 = vmul.f32 %v1287_v10, %v950_v32  ;;  %v2404_v31 = vadd.f32 %v2137_v23, %v2209_v41 }
 0x272   : > { %v1094_v36 = vmul.f32 %v1047_v1, %v966_v51  ;;  %v1431_v55 = vmul.f32 %v1415_v52, %v1271_v50  ;;  %v1238_v56 = vmul.f32 %v1191_v9, %v966_v51  ;;  %v1398_v37 = vmul.f32 %v1351_v15, %v966_v51 }
 0x273   : > { %v1133_v57 = vpop.permute.xlu1 %1132 }
 0x274   : > { %v2366_v58 = vpop.permute.xlu0 %1050  ;;  %v1110_v59 = vadd.f32 %v1094_v36, %v1030_v53  ;;  %v1690_v62 = vmul.f32 -1.442695, %v1431_v55  ;;  %v1254_v0 = vadd.f32 %v1238_v56, %v1174_v54  ;;  %v1414_v3 = vadd.f32 %v1398_v37, %v1334_v2 }
 0x275   : > { %796 = vrot.lane.b32.xlu1 %v2352_v35, %s2021_s6  ;;  %794 = vrot.lane.b32.xlu0 %v2356_v38, %s2021_s6 }
 0x276   : > { %1894 = vpow2.f32 %v1690_v62  ;;  %v1270_v63 = vmul.f32 %v1254_v0, %v1110_v59 }
 0x277   : > { %v1893_v1 = vpop.eup %1892  ;;  %v1197_v4 = vpop.permute.xlu1 %1196 }
 0x278   : > { %v2372_v5 = vpop.permute.xlu0 %1130  ;;  %v1430_v6 = vmul.f32 %v1414_v3, %v1270_v63  ;;  %v889_v7 = vadd.f32 1.0, %v1893_v1 }
 0x279   : > { %1004 = vrot.lane.b32.xlu1 %v2352_v35, %s2023_s8  ;;  %1002 = vrot.lane.b32.xlu0 %v2356_v38, %s2023_s8 }
 0x27a   : > { %v1689_v8 = vmul.f32 -1.442695, %v1430_v6  ;;  %1896 = vrcp.f32 %v889_v7 }
 0x27b   : > { %v1293_v9 = vpop.permute.xlu1 %1292 }
 0x27c   : > { %v2378_v10 = vpop.permute.xlu0 %1194  ;;  %1898 = vpow2.f32 %v1689_v8 }
 0x27d   : > { %1068 = vrot.lane.b32.xlu1 %v2352_v35, %s2024_s10  ;;  %1066 = vrot.lane.b32.xlu0 %v2356_v38, %s2024_s10 }
 0x27f   : > { %v1357_v11 = vpop.permute.xlu1 %1356 }
 0x280   : > { %v2384_v12 = vpop.permute.xlu0 %1290  ;;  %v1895_v13 = vpop.eup %1894 }
 0x281   : > { %v1495_v14 = vadd.f32 1.0, %v1895_v13  ;;  %1148 = vrot.lane.b32.xlu1 %v2352_v35, %s2025_s12  ;;  %1146 = vrot.lane.b32.xlu0 %v2356_v38, %s2025_s12 }
 0x283   : > { %1900 = vrcp.f32 %v1495_v14  ;;  %v715_v16 = vpop.permute.xlu1 %714 }
 0x284   : > { %v2390_v15 = vpop.permute.xlu0 %1354  ;;  %v1897_v17 = vpop.eup %1896  ;;  %v760_v18 = vmul.f32 %v715_v16, %v2193_v39  ;;  %v2400_v39 = vadd.f32 %v2207_v40, %v2137_v23 }
 0x285   : > { %v937_v19 = vmul.f32 2.0, %v1897_v17  ;;  %1212 = vrot.lane.b32.xlu1 %v2352_v35, %s2026_s13  ;;  %1210 = vrot.lane.b32.xlu0 %v2356_v38, %s2026_s13 }
 0x286   : > { %v1899_v20 = vpop.eup %1898  ;;  %v824_v21 = vmul.f32 %v2344_v26, %v760_v18 }
 0x287   : > { %v1494_v22 = vadd.f32 1.0, %v1899_v20  ;;  %v953_v24 = vsub.f32 1.0, %v937_v19  ;;  %v721_v27 = vpop.permute.xlu1 %720 }
 0x288   : > { %v719_v28 = vpop.permute.xlu0 %718  ;;  %v1675_v29 = vmul.f32 -1.442695, %v824_v21  ;;  %v763_v32 = vmul.f32 %v721_v27, %v2228_v42 }
 0x289   : > { %1902 = vrcp.f32 %v1494_v22  ;;  %v969_v30 = vand.u32 2147483647, %v953_v24  ;;  %1308 = vrot.lane.b32.xlu1 %v2352_v35, %s2027_s14  ;;  %1306 = vrot.lane.b32.xlu0 %v2356_v38, %s2027_s14  ;;  %v1033_v26 = vmul.f32 %v2342_v25, %v953_v24  ;;  %v762_v33 = vmul.f32 %v719_v28, %v2231_v43 }
 0x28a   : > { %1904 = vpow2.f32 %v1675_v29  ;;  %v1177_v41 = vmul.f32 %v1133_v57, %v953_v24  ;;  %v1337_v43 = vmul.f32 %v1293_v9, %v953_v24 }
 0x28b   : > { %v1097_v40 = vmul.f32 %v2358_v48, %v969_v30  ;;  %v1241_v34 = vmul.f32 %v1197_v4, %v969_v30  ;;  %v1401_v50 = vmul.f32 %v1357_v11, %v969_v30  ;;  %v785_v51 = vpop.permute.xlu1 %784 }
 0x28c   : > { %v783_v52 = vpop.permute.xlu0 %782  ;;  %v827_v25 = vmul.f32 %v785_v51, %v763_v32 }
 0x28d   : > { %v826_v53 = vmul.f32 %v783_v52, %v762_v33  ;;  %v1901_v54 = vpop.eup %1900  ;;  %v1113_v42 = vadd.f32 %v1097_v40, %v1033_v26  ;;  %v1257_v36 = vadd.f32 %v1241_v34, %v1177_v41  ;;  %736 = vrot.lane.b32.xlu1 %v2400_v39, %s2022_s7  ;;  %734 = vrot.lane.b32.xlu0 %v2404_v31, %s2022_s7 }
 0x28e   : > { %1544 = vst.msk [vmem:[%s2418_s19 + $0x8] sm:$0xff] %vm1542_vm13, %v1901_v54  ;;  %v1678_v48 = vmul.f32 -1.442695, %v827_v25  ;;  %v1417_v37 = vadd.f32 %v1401_v50, %v1337_v43  ;;  %v2467_v33 = vadd.f32 %v2245_v44, %v2137_v23  ;;  %v2471_v40 = vadd.f32 %v2137_v23, %v2247_v45 }
 0x28f   : > { %v1677_v55 = vmul.f32 -1.442695, %v826_v53  ;;  %v1273_v56 = vmul.f32 %v1257_v36, %v1113_v42  ;;  %v2427_v57 = vpop.permute.xlu1 %992 }
 0x290   : > { %v2429_v59 = vpop.permute.xlu0 %990  ;;  %1906 = vpow2.f32 %v1678_v48 }
 0x291   : > { %v1433_v62 = vmul.f32 %v1417_v37, %v1273_v56  ;;  %1908 = vpow2.f32 %v1677_v55  ;;  %800 = vrot.lane.b32.xlu1 %v2400_v39, %s2021_s6  ;;  %798 = vrot.lane.b32.xlu0 %v2404_v31, %s2021_s6 }
 0x293   : > { %v1903_v0 = vpop.eup %1902  ;;  %v1692_v2 = vmul.f32 -1.442695, %v1433_v62  ;;  %v2435_v63 = vpop.permute.xlu1 %1056 }
 0x294   : > { %v2437_v3 = vpop.permute.xlu0 %1054  ;;  %v1905_v1 = vpop.eup %1904  ;;  %1543 = vst.msk [vmem:[%s2418_s19] sm:$0xff] %vm1542_vm13, %v1903_v0 }
 0x295   : > { %1910 = vpow2.f32 %v1692_v2  ;;  %v888_v4 = vadd.f32 1.0, %v1905_v1  ;;  %1008 = vrot.lane.b32.xlu1 %v2400_v39, %s2023_s8  ;;  %1006 = vrot.lane.b32.xlu0 %v2404_v31, %s2023_s8 }
 0x297   : > { %1912 = vrcp.f32 %v888_v4  ;;  %v1137_v6 = vpop.permute.xlu1 %1136 }
 0x298   : > { %v1135_v7 = vpop.permute.xlu0 %1134 }
 0x299   : > { %1072 = vrot.lane.b32.xlu1 %v2400_v39, %s2024_s10  ;;  %1070 = vrot.lane.b32.xlu0 %v2404_v31, %s2024_s10 }
 0x29a   : > { %v1907_v8 = vpop.eup %1906 }
 0x29b   : > { %v1909_v9 = vpop.eup %1908  ;;  %v891_v11 = vadd.f32 1.0, %v1907_v8  ;;  %v1201_v13 = vpop.permute.xlu1 %1200 }
 0x29c   : > { %v1199_v14 = vpop.permute.xlu0 %1198  ;;  %v890_v16 = vadd.f32 1.0, %v1909_v9 }
 0x29d   : > { %1914 = vrcp.f32 %v891_v11  ;;  %1152 = vrot.lane.b32.xlu1 %v2400_v39, %s2025_s12  ;;  %1150 = vrot.lane.b32.xlu0 %v2404_v31, %s2025_s12 }
 0x29e   : > { %1916 = vrcp.f32 %v890_v16 }
 0x29f   : > { %v1911_v17 = vpop.eup %1910  ;;  %v1297_v18 = vpop.permute.xlu1 %1296 }
 0x2a0   : > { %v2453_v19 = vpop.permute.xlu0 %1294  ;;  %v1497_v20 = vadd.f32 1.0, %v1911_v17 }
 0x2a1   : > { %v1913_v21 = vpop.eup %1912  ;;  %1216 = vrot.lane.b32.xlu1 %v2400_v39, %s2026_s13  ;;  %1214 = vrot.lane.b32.xlu0 %v2404_v31, %s2026_s13 }
 0x2a2   : > { %1918 = vrcp.f32 %v1497_v20  ;;  %v936_v22 = vmul.f32 2.0, %v1913_v21 }
 0x2a3   : > { %v1361_v24 = vpop.permute.xlu1 %1360 }
 0x2a4   : > { %v1359_v27 = vpop.permute.xlu0 %1358  ;;  %v952_v28 = vsub.f32 1.0, %v936_v22 }
 0x2a5   : > { %1312 = vrot.lane.b32.xlu1 %v2400_v39, %s2027_s14  ;;  %1310 = vrot.lane.b32.xlu0 %v2404_v31, %s2027_s14 }
 0x2a6   : > { %v968_v29 = vand.u32 2147483647, %v952_v28  ;;  %v1032_v26 = vmul.f32 %v2360_v49, %v952_v28  ;;  %v1176_v32 = vmul.f32 %v2372_v5, %v952_v28  ;;  %v1336_v45 = vmul.f32 %v2384_v12, %v952_v28 }
 0x2a7   : > { %v1915_v30 = vpop.eup %1914  ;;  %v725_v41 = vpop.permute.xlu1 %724 }
 0x2a8   : > { %v723_v34 = vpop.permute.xlu0 %722  ;;  %v1917_v50 = vpop.eup %1916  ;;  %v1096_v51 = vmul.f32 %v2366_v58, %v968_v29  ;;  %v1240_v52 = vmul.f32 %v2378_v10, %v968_v29  ;;  %v1400_v25 = vmul.f32 %v2390_v15, %v968_v29  ;;  %v939_v49 = vmul.f32 2.0, %v1915_v30 }
 0x2a9   : > { %v938_v53 = vmul.f32 2.0, %v1917_v50  ;;  %740 = vrot.lane.b32.xlu1 %v2467_v33, %s2022_s7  ;;  %738 = vrot.lane.b32.xlu0 %v2471_v40, %s2022_s7  ;;  %v765_v58 = vmul.f32 %v725_v41, %v2270_v46  ;;  %v764_v10 = vmul.f32 %v723_v34, %v2273_v47 }
 0x2aa   : > { %v1112_v23 = vadd.f32 %v1096_v51, %v1032_v26  ;;  %v1256_v44 = vadd.f32 %v1240_v52, %v1176_v32  ;;  %v955_v5 = vsub.f32 1.0, %v939_v49  ;;  %v1416_v48 = vadd.f32 %v1400_v25, %v1336_v45 }
 0x2ab   : > { %v954_v54 = vsub.f32 1.0, %v938_v53  ;;  %v789_v15 = vpop.permute.xlu1 %788 }
 0x2ac   : > { %v787_v42 = vpop.permute.xlu0 %786  ;;  %v1919_v36 = vpop.eup %1918  ;;  %v1272_v43 = vmul.f32 %v1256_v44, %v1112_v23  ;;  %v1035_v55 = vmul.f32 %v2427_v57, %v955_v5  ;;  %v971_v56 = vand.u32 2147483647, %v955_v5  ;;  %v1179_v12 = vmul.f32 %v1137_v6, %v955_v5 }
 0x2ad   : > { %1546 = vst.msk [vmem:[%s2418_s19 + $0x18] sm:$0xff] %vm1542_vm13, %v1919_v36  ;;  %v1034_v37 = vmul.f32 %v2429_v59, %v954_v54  ;;  %v970_v62 = vand.u32 2147483647, %v954_v54  ;;  %v1178_v0 = vmul.f32 %v1135_v7, %v954_v54  ;;  %804 = vrot.lane.b32.xlu1 %v2467_v33, %s2021_s6  ;;  %802 = vrot.lane.b32.xlu0 %v2471_v40, %s2021_s6 }
 0x2ae   : > { %v1432_v46 = vmul.f32 %v1416_v48, %v1272_v43  ;;  %v1099_v47 = vmul.f32 %v2435_v63, %v971_v56  ;;  %v1243_v2 = vmul.f32 %v1201_v13, %v971_v56  ;;  %v1339_v1 = vmul.f32 %v1297_v18, %v955_v5 }
 0x2af   : > { %v1098_v57 = vmul.f32 %v2437_v3, %v970_v62  ;;  %v1242_v4 = vmul.f32 %v1199_v14, %v970_v62  ;;  %v1403_v8 = vmul.f32 %v1361_v24, %v971_v56  ;;  %v1402_v9 = vmul.f32 %v1359_v27, %v970_v62  ;;  %v2493_v59 = vpop.permute.xlu1 %996 }
 0x2b0   : > { %v2495_v6 = vpop.permute.xlu0 %994  ;;  %v1691_v7 = vmul.f32 -1.442695, %v1432_v46  ;;  %v1115_v11 = vadd.f32 %v1099_v47, %v1035_v55  ;;  %v1259_v16 = vadd.f32 %v1243_v2, %v1179_v12  ;;  %v829_v17 = vmul.f32 %v789_v15, %v765_v58 }
 0x2b1   : > { %v1114_v20 = vadd.f32 %v1098_v57, %v1034_v37  ;;  %v1258_v21 = vadd.f32 %v1242_v4, %v1178_v0  ;;  %v1338_v22 = vmul.f32 %v2453_v19, %v954_v54  ;;  %v1419_v63 = vadd.f32 %v1403_v8, %v1339_v1  ;;  %1012 = vrot.lane.b32.xlu1 %v2467_v33, %s2023_s8 }
 0x2b2   : > { %1920 = vpow2.f32 %v1691_v7  ;;  %v1275_v3 = vmul.f32 %v1259_v16, %v1115_v11  ;;  %v1680_v13 = vmul.f32 -1.442695, %v829_v17  ;;  %v828_v14 = vmul.f32 %v787_v42, %v764_v10  ;;  %1366 = vrot.lane.b32.xlu0 %v2315_v61, %s2028_s15 }
 0x2b3   : > { %v1274_v18 = vmul.f32 %v1258_v21, %v1114_v20  ;;  %v1418_v24 = vadd.f32 %v1402_v9, %v1338_v22  ;;  %v2502_v27 = vpop.permute.xlu1 %1060 }
 0x2b4   : > { %v2504_v28 = vpop.permute.xlu0 %1058  ;;  %v1435_v29 = vmul.f32 %v1419_v63, %v1275_v3  ;;  %1922 = vpow2.f32 %v1680_v13  ;;  %v1679_v19 = vmul.f32 -1.442695, %v828_v14 }
 0x2b5   : > { %v1434_v30 = vmul.f32 %v1418_v24, %v1274_v18  ;;  %1076 = vrot.lane.b32.xlu1 %v2467_v33, %s2024_s10 }
 0x2b6   : > { %v1694_v26 = vmul.f32 -1.442695, %v1435_v29  ;;  %1924 = vpow2.f32 %v1679_v19  ;;  %1370 = vrot.lane.b32.xlu0 %v2356_v38, %s2028_s15 }
 0x2b7   : > { %v1693_v32 = vmul.f32 -1.442695, %v1434_v30  ;;  %v2510_v41 = vpop.permute.xlu1 %1140 }
 0x2b8   : > { %v2512_v34 = vpop.permute.xlu0 %1138  ;;  %1926 = vpow2.f32 %v1694_v26 }
 0x2b9   : > { %1928 = vpow2.f32 %v1693_v32  ;;  %1156 = vrot.lane.b32.xlu1 %v2467_v33, %s2025_s12 }
 0x2ba   : > { %1374 = vrot.lane.b32.xlu0 %v2404_v31, %s2028_s15 }
 0x2bb   : > { %v2518_v50 = vpop.permute.xlu1 %1204 }
 0x2bc   : > { %v2520_v51 = vpop.permute.xlu0 %1202  ;;  %v1921_v52 = vpop.eup %1920 }
 0x2bd   : > { %v1496_v25 = vadd.f32 1.0, %v1921_v52  ;;  %1220 = vrot.lane.b32.xlu1 %v2467_v33, %s2026_s13 }
 0x2be   : > { %v1923_v49 = vpop.eup %1922  ;;  %1010 = vrot.lane.b32.xlu0 %v2471_v40, %s2023_s8 }
 0x2bf   : > { %1930 = vrcp.f32 %v1496_v25  ;;  %v893_v53 = vadd.f32 1.0, %v1923_v49  ;;  %v2526_v23 = vpop.permute.xlu1 %1300 }
 0x2c0   : > { %v2528_v44 = vpop.permute.xlu0 %1298  ;;  %v1925_v45 = vpop.eup %1924 }
 0x2c1   : > { %1932 = vrcp.f32 %v893_v53  ;;  %v892_v5 = vadd.f32 1.0, %v1925_v45  ;;  %1316 = vrot.lane.b32.xlu1 %v2467_v33, %s2027_s14 }
 0x2c2   : > { %v1927_v54 = vpop.eup %1926  ;;  %1074 = vrot.lane.b32.xlu0 %v2471_v40, %s2024_s10 }
 0x2c3   : > { %v1929_v58 = vpop.eup %1928  ;;  %v1499_v10 = vadd.f32 1.0, %v1927_v54  ;;  %1934 = vrcp.f32 %v892_v5  ;;  %v1365_v15 = vpop.permute.xlu1 %1364 }
 0x2c4   : > { %v1363_v42 = vpop.permute.xlu0 %1362  ;;  %v1498_v36 = vadd.f32 1.0, %v1929_v58 }
 0x2c5   : > { %1936 = vrcp.f32 %v1499_v10  ;;  %1368 = vrot.lane.b32.xlu1 %v2311_v60, %s2028_s15 }
 0x2c6   : > { %1938 = vrcp.f32 %v1498_v36  ;;  %1154 = vrot.lane.b32.xlu0 %v2471_v40, %s2025_s12 }
 0x2c7   : > { %v729_v43 = vpop.permute.xlu1 %728 }
 0x2c8   : > { %v727_v48 = vpop.permute.xlu0 %726  ;;  %v767_v56 = vmul.f32 %v729_v43, %v2311_v60 }
 0x2c9   : > { %v1931_v55 = vpop.eup %1930  ;;  %1372 = vrot.lane.b32.xlu1 %v2352_v35, %s2028_s15  ;;  %v766_v37 = vmul.f32 %v727_v48, %v2315_v61 }
 0x2ca   : > { %1545 = vst.msk [vmem:[%s2418_s19 + $0x10] sm:$0xff] %vm1542_vm13, %v1931_v55  ;;  %1218 = vrot.lane.b32.xlu0 %v2471_v40, %s2026_s13 }
 0x2cb   : > { %v1933_v62 = vpop.eup %1932  ;;  %v793_v12 = vpop.permute.xlu1 %792 }
 0x2cc   : > { %v791_v0 = vpop.permute.xlu0 %790  ;;  %v941_v46 = vmul.f32 2.0, %v1933_v62  ;;  %v831_v47 = vmul.f32 %v793_v12, %v767_v56 }
 0x2cd   : > { %v830_v2 = vmul.f32 %v791_v0, %v766_v37  ;;  %v1935_v1 = vpop.eup %1934  ;;  %1376 = vrot.lane.b32.xlu1 %v2400_v39, %s2028_s15 }
 0x2ce   : > { %v957_v57 = vsub.f32 1.0, %v941_v46  ;;  %v940_v4 = vmul.f32 2.0, %v1935_v1  ;;  %v1682_v60 = vmul.f32 -1.442695, %v831_v47  ;;  %1314 = vrot.lane.b32.xlu0 %v2471_v40, %s2027_s14 }
 0x2cf   : > { %v1937_v61 = vpop.eup %1936  ;;  %v1681_v8 = vmul.f32 -1.442695, %v830_v2  ;;  %v2550_v9 = vpop.permute.xlu1 %1000 }
 0x2d0   : > { %v2552_v7 = vpop.permute.xlu0 %998  ;;  %v1939_v11 = vpop.eup %1938  ;;  %1548 = vst.msk [vmem:[%s2418_s19 + $0x28] sm:$0xff] %vm1542_vm13, %v1937_v61  ;;  %v956_v16 = vsub.f32 1.0, %v940_v4  ;;  %v973_v17 = vand.u32 2147483647, %v957_v57  ;;  %v1037_v20 = vmul.f32 %v2493_v59, %v957_v57  ;;  %1940 = vpow2.f32 %v1682_v60 }
 0x2d1   : > { %1547 = vst.msk [vmem:[%s2418_s19 + $0x20] sm:$0xff] %vm1542_vm13, %v1939_v11  ;;  %1380 = vrot.lane.b32.xlu1 %v2467_v33, %s2028_s15  ;;  %v1181_v3 = vmul.f32 %v2510_v41, %v957_v57  ;;  %1942 = vpow2.f32 %v1681_v8  ;;  %v1341_v26 = vmul.f32 %v2526_v23, %v957_v57 }
 0x2d2   : > { %v1036_v21 = vmul.f32 %v2495_v6, %v956_v16  ;;  %v1101_v22 = vmul.f32 %v2502_v27, %v973_v17  ;;  %v972_v63 = vand.u32 2147483647, %v956_v16  ;;  %1378 = vrot.lane.b32.xlu0 %v2471_v40, %s2028_s15  ;;  %v1180_v13 = vmul.f32 %v2512_v34, %v956_v16 }
 0x2d3   : > { %v1245_v14 = vmul.f32 %v2518_v50, %v973_v17  ;;  %v1405_v18 = vmul.f32 %v1365_v15, %v973_v17  ;;  %v2568_v59 = vpop.permute.xlu1 %1064  ;;  %v1340_v34 = vmul.f32 %v2528_v44, %v956_v16 }
 0x2d4   : > { %v2570_v24 = vpop.permute.xlu0 %1062  ;;  %v1117_v29 = vadd.f32 %v1101_v22, %v1037_v20  ;;  %v1100_v6 = vmul.f32 %v2504_v28, %v972_v63  ;;  %v1244_v27 = vmul.f32 %v2520_v51, %v972_v63  ;;  %v1404_v19 = vmul.f32 %v1363_v42, %v972_v63 }
 0x2d5   : > { %v1261_v30 = vadd.f32 %v1245_v14, %v1181_v3  ;;  %v1421_v52 = vadd.f32 %v1405_v18, %v1341_v26 }
 0x2d6   : > { %v1116_v32 = vadd.f32 %v1100_v6, %v1036_v21  ;;  %v1260_v41 = vadd.f32 %v1244_v27, %v1180_v13  ;;  %v1420_v45 = vadd.f32 %v1404_v19, %v1340_v34 }
 0x2d7   : > { %v1277_v50 = vmul.f32 %v1261_v30, %v1117_v29  ;;  %v1145_v25 = vpop.permute.xlu1 %1144 }
 0x2d8   : > { %v1143_v49 = vpop.permute.xlu0 %1142  ;;  %v1276_v53 = vmul.f32 %v1260_v41, %v1116_v32 }
 0x2d9   : > { %v1437_v5 = vmul.f32 %v1421_v52, %v1277_v50 }
 0x2da   : > { %v1436_v54 = vmul.f32 %v1420_v45, %v1276_v53  ;;  %v1941_v58 = vpop.eup %1940 }
 0x2db   : > { %v1696_v28 = vmul.f32 -1.442695, %v1437_v5  ;;  %v1209_v10 = vpop.permute.xlu1 %1208  ;;  %v895_v42 = vadd.f32 1.0, %v1941_v58  ;;  %v1943_v36 = vpop.eup %1942 }
 0x2dc   : > { %v1207_v51 = vpop.permute.xlu0 %1206  ;;  %v1695_v15 = vmul.f32 -1.442695, %v1436_v54  ;;  %v894_v23 = vadd.f32 1.0, %v1943_v36 }
 0x2dd   : > { %1944 = vpow2.f32 %v1696_v28 }
 0x2de   : > { %1946 = vpow2.f32 %v1695_v15 }
 0x2df   : > { %1948 = vrcp.f32 %v895_v42  ;;  %v1305_v44 = vpop.permute.xlu1 %1304 }
 0x2e0   : > { %v2576_v43 = vpop.permute.xlu0 %1302  ;;  %1950 = vrcp.f32 %v894_v23 }
 0x2e3   : > { %v733_v48 = vpop.permute.xlu1 %732 }
 0x2e4   : > { %v731_v55 = vpop.permute.xlu0 %730  ;;  %v769_v56 = vmul.f32 %v733_v48, %v2352_v35 }
 0x2e5   : > { %v768_v17 = vmul.f32 %v731_v55, %v2356_v38 }
 0x2e7   : > { %v1945_v37 = vpop.eup %1944  ;;  %v797_v62 = vpop.permute.xlu1 %796 }
 0x2e8   : > { %v795_v12 = vpop.permute.xlu0 %794  ;;  %v1947_v0 = vpop.eup %1946  ;;  %v1501_v46 = vadd.f32 1.0, %v1945_v37  ;;  %v833_v47 = vmul.f32 %v797_v62, %v769_v56 }
 0x2e9   : > { %v1949_v2 = vpop.eup %1948  ;;  %v1500_v1 = vadd.f32 1.0, %v1947_v0  ;;  %v832_v38 = vmul.f32 %v795_v12, %v768_v17 }
 0x2ea   : > { %v1951_v57 = vpop.eup %1950  ;;  %1952 = vrcp.f32 %v1501_v46  ;;  %v943_v4 = vmul.f32 2.0, %v1949_v2  ;;  %v1684_v60 = vmul.f32 -1.442695, %v833_v47 }
 0x2eb   : > { %1954 = vrcp.f32 %v1500_v1  ;;  %v942_v61 = vmul.f32 2.0, %v1951_v57  ;;  %v1005_v8 = vpop.permute.xlu1 %1004 }
 0x2ec   : > { %v2579_v11 = vpop.permute.xlu0 %1002  ;;  %v959_v16 = vsub.f32 1.0, %v943_v4  ;;  %1956 = vpow2.f32 %v1684_v60 }
 0x2ed   : > { %v2581_v35 = vsub.f32 1.0, %v942_v61 }
 0x2ee   : > { %v1039_v20 = vmul.f32 %v2550_v9, %v959_v16  ;;  %v2585_v21 = vand.u32 2147483647, %v959_v16  ;;  %v1183_v22 = vmul.f32 %v1145_v25, %v959_v16  ;;  %v2587_v63 = vmul.f32 %v1305_v44, %v959_v16 }
 0x2ef   : > { %v2590_v3 = vand.u32 2147483647, %v2581_v35  ;;  %v1069_v13 = vpop.permute.xlu1 %1068  ;;  %v1038_v9 = vmul.f32 %v2552_v7, %v2581_v35  ;;  %v1182_v27 = vmul.f32 %v1143_v49, %v2581_v35  ;;  %v1683_v25 = vmul.f32 -1.442695, %v832_v38 }
 0x2f0   : > { %v2592_v14 = vpop.permute.xlu0 %1066  ;;  %v1103_v18 = vmul.f32 %v2568_v59, %v2585_v21  ;;  %v1247_v29 = vmul.f32 %v1209_v10, %v2585_v21 }
 0x2f1   : > { %v1102_v6 = vmul.f32 %v2570_v24, %v2590_v3  ;;  %v1246_v19 = vmul.f32 %v1207_v51, %v2590_v3  ;;  %1958 = vpow2.f32 %v1683_v25 }
 0x2f2   : > { %v1119_v30 = vadd.f32 %v1103_v18, %v1039_v20  ;;  %v1263_v26 = vadd.f32 %v1247_v29, %v1183_v22 }
 0x2f3   : > { %v1118_v32 = vadd.f32 %v1102_v6, %v1038_v9  ;;  %v1262_v41 = vadd.f32 %v1246_v19, %v1182_v27  ;;  %v1149_v59 = vpop.permute.xlu1 %1148 }
 0x2f4   : > { %v2603_v34 = vpop.permute.xlu0 %1146  ;;  %v1953_v50 = vpop.eup %1952  ;;  %v2605_v52 = vmul.f32 %v1263_v26, %v1119_v30 }
 0x2f5   : > { %v1955_v7 = vpop.eup %1954  ;;  %1550 = vst.msk [vmem:[%s2418_s19 + $0x38] sm:$0xff] %vm1542_vm13, %v1953_v50  ;;  %v2609_v24 = vmul.f32 %v1262_v41, %v1118_v32 }
 0x2f6   : > { %v1957_v53 = vpop.eup %1956  ;;  %1549 = vst.msk [vmem:[%s2418_s19 + $0x30] sm:$0xff] %vm1542_vm13, %v1955_v7 }
 0x2f7   : > { %v897_v49 = vadd.f32 1.0, %v1957_v53  ;;  %v1213_v45 = vpop.permute.xlu1 %1212 }
 0x2f8   : > { %v2613_v5 = vpop.permute.xlu0 %1210 }
 0x2f9   : > { %1960 = vrcp.f32 %v897_v49 }
 0x2fb   : > { %v2615_v54 = vpop.permute.xlu1 %1308  ;;  %v1959_v51 = vpop.eup %1958 }
 0x2fc   : > { %v2617_v58 = vpop.permute.xlu0 %1306  ;;  %v896_v37 = vadd.f32 1.0, %v1959_v51 }
 0x2fe   : > { %1962 = vrcp.f32 %v896_v37 }
 0x2ff   : > { %v737_v28 = vpop.permute.xlu1 %736 }
 0x300   : > { %v735_v10 = vpop.permute.xlu0 %734  ;;  %v771_v15 = vmul.f32 %v737_v28, %v2400_v39 }
 0x301   : > { %v770_v42 = vmul.f32 %v735_v10, %v2404_v31 }
 0x303   : > { %v1961_v36 = vpop.eup %1960  ;;  %v801_v23 = vpop.permute.xlu1 %800 }
 0x304   : > { %v799_v44 = vpop.permute.xlu0 %798  ;;  %v945_v48 = vmul.f32 2.0, %v1961_v36  ;;  %v835_v55 = vmul.f32 %v801_v23, %v771_v15 }
 0x305   : > { %v834_v56 = vmul.f32 %v799_v44, %v770_v42 }
 0x306   : > { %v2621_v62 = vsub.f32 1.0, %v945_v48  ;;  %v1686_v2 = vmul.f32 -1.442695, %v835_v55 }
 0x307   : > { %v1685_v12 = vmul.f32 -1.442695, %v834_v56  ;;  %v2623_v0 = vpop.permute.xlu1 %1008  ;;  %v1342_v56 = vmul.f32 %v2576_v43, %v2581_v35 }
 0x308   : > { %v1007_v46 = vpop.permute.xlu0 %1006  ;;  %v2626_v47 = vand.u32 2147483647, %v2621_v62  ;;  %v1041_v39 = vmul.f32 %v1005_v8, %v2621_v62  ;;  %v1185_v1 = vmul.f32 %v1149_v59, %v2621_v62  ;;  %v1963_v18 = vpop.eup %1962 }
 0x309   : > { %1964 = vpow2.f32 %v1685_v12  ;;  %v944_v6 = vmul.f32 2.0, %v1963_v18 }
 0x30a   : > { %v1105_v31 = vmul.f32 %v1069_v13, %v2626_v47  ;;  %v1249_v57 = vmul.f32 %v1213_v45, %v2626_v47  ;;  %1966 = vpow2.f32 %v1686_v2 }
 0x30b   : > { %v2632_v4 = vpop.permute.xlu1 %1072  ;;  %v960_v26 = vsub.f32 1.0, %v944_v6 }
 0x30c   : > { %v1071_v60 = vpop.permute.xlu0 %1070  ;;  %v1121_v61 = vadd.f32 %v1105_v31, %v1041_v39  ;;  %v1265_v16 = vadd.f32 %v1249_v57, %v1185_v1 }
 0x30d   : > { %v976_v25 = vand.u32 2147483647, %v960_v26  ;;  %v1040_v44 = vmul.f32 %v2579_v11, %v960_v26  ;;  %v1344_v39 = vmul.f32 %v2617_v58, %v960_v26 }
 0x30e   : > { %v2634_v17 = vmul.f32 %v1265_v16, %v1121_v61 }
 0x30f   : > { %v2636_v20 = vpop.permute.xlu1 %1152  ;;  %v1104_v15 = vmul.f32 %v2592_v14, %v976_v25  ;;  %v1248_v42 = vmul.f32 %v2613_v5, %v976_v25 }
 0x310   : > { %v1151_v22 = vpop.permute.xlu0 %1150 }
 0x311   : > { %v1120_v14 = vadd.f32 %v1104_v15, %v1040_v44 }
 0x313   : > { %v2638_v8 = vpop.permute.xlu1 %1216  ;;  %v1965_v29 = vpop.eup %1964 }
 0x314   : > { %v1215_v13 = vpop.permute.xlu0 %1214  ;;  %v1967_v38 = vpop.eup %1966  ;;  %v898_v9 = vadd.f32 1.0, %v1965_v29 }
 0x315   : > { %v899_v30 = vadd.f32 1.0, %v1967_v38 }
 0x316   : > { %1968 = vrcp.f32 %v898_v9 }
 0x317   : > { %v2640_v27 = vpop.permute.xlu1 %1312  ;;  %1970 = vrcp.f32 %v899_v30 }
 0x318   : > { %v1311_v19 = vpop.permute.xlu0 %1310 }
 0x31b   : > { %v741_v32 = vpop.permute.xlu1 %740 }
 0x31c   : > { %v739_v41 = vpop.permute.xlu0 %738  ;;  %v773_v59 = vmul.f32 %v741_v32, %v2467_v33 }
 0x31d   : > { %v772_v50 = vmul.f32 %v739_v41, %v2471_v40  ;;  %v1184_v40 = vmul.f32 %v2603_v34, %v960_v26 }
 0x31f   : > { %v805_v7 = vpop.permute.xlu1 %804  ;;  %v1264_v12 = vadd.f32 %v1248_v42, %v1184_v40 }
 0x320   : > { %v803_v53 = vpop.permute.xlu0 %802  ;;  %v837_v49 = vmul.f32 %v805_v7, %v773_v59  ;;  %v1969_v28 = vpop.eup %1968 }
 0x321   : > { %v836_v45 = vmul.f32 %v803_v53, %v772_v50  ;;  %v946_v36 = vmul.f32 2.0, %v1969_v28  ;;  %v1971_v37 = vpop.eup %1970  ;;  %v1280_v29 = vmul.f32 %v1264_v12, %v1120_v14 }
 0x322   : > { %v1688_v10 = vmul.f32 -1.442695, %v837_v49  ;;  %v947_v18 = vmul.f32 2.0, %v1971_v37 }
 0x323   : > { %v1687_v51 = vmul.f32 -1.442695, %v836_v45  ;;  %v2646_v23 = vpop.permute.xlu1 %1012  ;;  %v962_v48 = vsub.f32 1.0, %v946_v36 }
 0x324   : > { %1972 = vpow2.f32 %v1688_v10  ;;  %v1367_v33 = vpop.permute.xlu0 %1366  ;;  %v963_v26 = vsub.f32 1.0, %v947_v18 }
 0x325   : > { %1974 = vpow2.f32 %v1687_v51  ;;  %v1406_v55 = vmul.f32 %v1367_v33, %v2590_v3  ;;  %v978_v5 = vand.u32 2147483647, %v962_v48  ;;  %v1042_v11 = vmul.f32 %v1007_v46, %v962_v48 }
 0x326   : > { %v1186_v34 = vmul.f32 %v1151_v22, %v962_v48  ;;  %v1346_v32 = vmul.f32 %v1311_v19, %v962_v48  ;;  %v979_v49 = vand.u32 2147483647, %v963_v26  ;;  %v1043_v33 = vmul.f32 %v2623_v0, %v963_v26 }
 0x327   : > { %v2653_v2 = vpop.permute.xlu1 %1076  ;;  %v1422_v31 = vadd.f32 %v1406_v55, %v1342_v56  ;;  %v1106_v57 = vmul.f32 %v1071_v60, %v978_v5  ;;  %v1250_v61 = vmul.f32 %v1215_v13, %v978_v5  ;;  %v1187_v48 = vmul.f32 %v2636_v20, %v963_v26 }
 0x328   : > { %v1371_v1 = vpop.permute.xlu0 %1370  ;;  %v1107_v10 = vmul.f32 %v2632_v4, %v979_v49  ;;  %v1251_v42 = vmul.f32 %v2638_v8, %v979_v49  ;;  %v1345_v0 = vmul.f32 %v2615_v54, %v2621_v62 }
 0x329   : > { %v1408_v16 = vmul.f32 %v1371_v1, %v976_v25  ;;  %v1438_v3 = vmul.f32 %v1422_v31, %v2609_v24  ;;  %v1122_v43 = vadd.f32 %v1106_v57, %v1042_v11  ;;  %v1266_v35 = vadd.f32 %v1250_v61, %v1186_v34 }
 0x32a   : > { %v1123_v37 = vadd.f32 %v1107_v10, %v1043_v33  ;;  %v1267_v4 = vadd.f32 %v1251_v42, %v1187_v48  ;;  %v1347_v34 = vmul.f32 %v2640_v27, %v963_v26 }
 0x32b   : > { %v1424_v38 = vadd.f32 %v1408_v16, %v1344_v39  ;;  %v1157_v9 = vpop.permute.xlu1 %1156  ;;  %v1697_v6 = vmul.f32 -1.442695, %v1438_v3  ;;  %v1282_v22 = vmul.f32 %v1266_v35, %v1122_v43 }
 0x32c   : > { %v1375_v30 = vpop.permute.xlu0 %1374  ;;  %v1283_v3 = vmul.f32 %v1267_v4, %v1123_v37 }
 0x32d   : > { %v1440_v41 = vmul.f32 %v1424_v38, %v1280_v29  ;;  %v1410_v58 = vmul.f32 %v1375_v30, %v978_v5  ;;  %1976 = vpow2.f32 %v1697_v6 }
 0x32e   : > { %v1973_v46 = vpop.eup %1972 }
 0x32f   : > { %v1975_v60 = vpop.eup %1974  ;;  %v901_v13 = vadd.f32 1.0, %v1973_v46  ;;  %v1699_v59 = vmul.f32 -1.442695, %v1440_v41  ;;  %v1426_v50 = vadd.f32 %v1410_v58, %v1346_v32  ;;  %v1221_v25 = vpop.permute.xlu1 %1220 }
 0x330   : > { %v900_v24 = vadd.f32 1.0, %v1975_v60  ;;  %v1011_v7 = vpop.permute.xlu0 %1010 }
 0x331   : > { %1978 = vrcp.f32 %v901_v13  ;;  %v1442_v53 = vmul.f32 %v1426_v50, %v1282_v22 }
 0x332   : > { %1980 = vrcp.f32 %v900_v24 }
 0x333   : > { %1982 = vpow2.f32 %v1699_v59  ;;  %v1701_v45 = vmul.f32 -1.442695, %v1442_v53  ;;  %v1317_v19 = vpop.permute.xlu1 %1316 }
 0x334   : > { %v1075_v28 = vpop.permute.xlu0 %1074 }
 0x335   : > { %1984 = vpow2.f32 %v1701_v45 }
 0x337   : > { %v1369_v51 = vpop.permute.xlu1 %1368  ;;  %v1977_v15 = vpop.eup %1976 }
 0x338   : > { %v1407_v36 = vmul.f32 %v1369_v51, %v2585_v21  ;;  %v1155_v44 = vpop.permute.xlu0 %1154  ;;  %v1502_v40 = vadd.f32 1.0, %v1977_v15 }
 0x33a   : > { %v1423_v55 = vadd.f32 %v1407_v36, %v2587_v63  ;;  %1986 = vrcp.f32 %v1502_v40 }
 0x33b   : > { %v1979_v56 = vpop.eup %1978  ;;  %v1373_v14 = vpop.permute.xlu1 %1372 }
 0x33c   : > { %v1981_v12 = vpop.eup %1980  ;;  %v949_v5 = vmul.f32 2.0, %v1979_v56  ;;  %v1439_v39 = vmul.f32 %v1423_v55, %v2605_v52  ;;  %v1409_v8 = vmul.f32 %v1373_v14, %v2626_v47  ;;  %v1219_v21 = vpop.permute.xlu0 %1218 }
 0x33d   : > { %v1983_v11 = vpop.eup %1982  ;;  %v948_v31 = vmul.f32 2.0, %v1981_v12 }
 0x33e   : > { %v965_v20 = vsub.f32 1.0, %v949_v5  ;;  %v1504_v1 = vadd.f32 1.0, %v1983_v11  ;;  %v1698_v63 = vmul.f32 -1.442695, %v1439_v39  ;;  %v1425_v16 = vadd.f32 %v1409_v8, %v1345_v0 }
 0x33f   : > { %v1985_v57 = vpop.eup %1984  ;;  %v964_v61 = vsub.f32 1.0, %v948_v31  ;;  %v1377_v18 = vpop.permute.xlu1 %1376 }
 0x340   : > { %v1045_v52 = vmul.f32 %v2646_v23, %v965_v20  ;;  %v981_v29 = vand.u32 2147483647, %v965_v20  ;;  %1988 = vrcp.f32 %v1504_v1  ;;  %v1315_v47 = vpop.permute.xlu0 %1314  ;;  %v1189_v43 = vmul.f32 %v1157_v9, %v965_v20 }
 0x341   : > { %v1506_v35 = vadd.f32 1.0, %v1985_v57  ;;  %v1044_v38 = vmul.f32 %v1011_v7, %v964_v61  ;;  %v980_v54 = vand.u32 2147483647, %v964_v61  ;;  %1990 = vpow2.f32 %v1698_v63 }
 0x342   : > { %v1109_v62 = vmul.f32 %v2653_v2, %v981_v29  ;;  %v1253_v6 = vmul.f32 %v1221_v25, %v981_v29  ;;  %v1188_v30 = vmul.f32 %v1155_v44, %v964_v61  ;;  %v1441_v32 = vmul.f32 %v1425_v16, %v2634_v17 }
 0x343   : > { %1992 = vrcp.f32 %v1506_v35  ;;  %v1108_v27 = vmul.f32 %v1075_v28, %v980_v54  ;;  %v1252_v41 = vmul.f32 %v1219_v21, %v980_v54  ;;  %v1381_v58 = vpop.permute.xlu1 %1380  ;;  %v1349_v26 = vmul.f32 %v1317_v19, %v965_v20 }
 0x344   : > { %v1125_v23 = vadd.f32 %v1109_v62, %v1045_v52  ;;  %v1269_v46 = vadd.f32 %v1253_v6, %v1189_v43  ;;  %v1411_v60 = vmul.f32 %v1377_v18, %v979_v49  ;;  %v1379_v9 = vpop.permute.xlu0 %1378  ;;  %v1987_v22 = vpop.eup %1986  ;;  %v1700_v59 = vmul.f32 -1.442695, %v1441_v32 }
 0x345   : > { %v1124_v13 = vadd.f32 %v1108_v27, %v1044_v38  ;;  %v1268_v50 = vadd.f32 %v1252_v41, %v1188_v30  ;;  %v1413_v2 = vmul.f32 %v1381_v58, %v981_v29  ;;  %1551 = vst.msk [vmem:[%s2418_s19 + $0x40] sm:$0xff] %vm1542_vm13, %v1987_v22  ;;  %v1348_v7 = vmul.f32 %v1315_v47, %v964_v61 }
 0x346   : > { %v1285_v25 = vmul.f32 %v1269_v46, %v1125_v23  ;;  %v1427_v24 = vadd.f32 %v1411_v60, %v1347_v34  ;;  %v1412_v53 = vmul.f32 %v1379_v9, %v980_v54  ;;  %1994 = vpow2.f32 %v1700_v59 }
 0x347   : > { %v1284_v17 = vmul.f32 %v1268_v50, %v1124_v13  ;;  %v1429_v45 = vadd.f32 %v1413_v2, %v1349_v26 }
 0x348   : > { %v1443_v28 = vmul.f32 %v1427_v24, %v1283_v3  ;;  %v1428_v19 = vadd.f32 %v1412_v53, %v1348_v7 }
 0x349   : > { %v1445_v49 = vmul.f32 %v1429_v45, %v1285_v25 }
 0x34a   : > { %v1989_v10 = vpop.eup %1988  ;;  %v1702_v51 = vmul.f32 -1.442695, %v1443_v28  ;;  %v1444_v15 = vmul.f32 %v1428_v19, %v1284_v17 }
 0x34b   : > { %1553 = vst.msk [vmem:[%s2418_s19 + $0x50] sm:$0xff] %vm1542_vm13, %v1989_v10  ;;  %v1704_v42 = vmul.f32 -1.442695, %v1445_v49  ;;  %v1991_v36 = vpop.eup %1990 }
 0x34c   : > { %1996 = vpow2.f32 %v1702_v51  ;;  %v1703_v44 = vmul.f32 -1.442695, %v1444_v15  ;;  %v1503_v40 = vadd.f32 1.0, %v1991_v36 }
 0x34d   : > { %v1993_v33 = vpop.eup %1992  ;;  %1998 = vpow2.f32 %v1704_v42 }
 0x34e   : > { %1555 = vst.msk [vmem:[%s2418_s19 + $0x60] sm:$0xff] %vm1542_vm13, %v1993_v33  ;;  %2000 = vpow2.f32 %v1703_v44 }
 0x34f   : > { %2002 = vrcp.f32 %v1503_v40 }
 0x350   : > { %v1995_v48 = vpop.eup %1994 }
 0x351   : > { %v1505_v55 = vadd.f32 1.0, %v1995_v48 }
 0x353   : > { %2004 = vrcp.f32 %v1505_v55 }
 0x356   : > { %v1997_v56 = vpop.eup %1996 }
 0x357   : > { %v1999_v37 = vpop.eup %1998  ;;  %v1507_v14 = vadd.f32 1.0, %v1997_v56 }
 0x358   : > { %v2001_v12 = vpop.eup %2000  ;;  %v1509_v4 = vadd.f32 1.0, %v1999_v37 }
 0x359   : > { %v2003_v5 = vpop.eup %2002  ;;  %2006 = vrcp.f32 %v1507_v14  ;;  %v1508_v39 = vadd.f32 1.0, %v2001_v12 }
 0x35a   : > { %1552 = vst.msk [vmem:[%s2418_s19 + $0x48] sm:$0xff] %vm1542_vm13, %v2003_v5  ;;  %2008 = vrcp.f32 %v1509_v4 }
 0x35b   : > { %2010 = vrcp.f32 %v1508_v39 }
 0x35d   : > { %v2005_v8 = vpop.eup %2004 }
 0x35e   : > { %1554 = vst.msk [vmem:[%s2418_s19 + $0x58] sm:$0xff] %vm1542_vm13, %v2005_v8 }
 0x363   : > { %v2007_v21 = vpop.eup %2006 }
 0x364   : > { %v2009_v11 = vpop.eup %2008  ;;  %1556 = vst.msk [vmem:[%s2418_s19 + $0x68] sm:$0xff] %vm1542_vm13, %v2007_v21 }
 0x365   : > { %v2011_v0 = vpop.eup %2010  ;;  %1558 = vst.msk [vmem:[%s2418_s19 + $0x78] sm:$0xff] %vm1542_vm13, %v2009_v11 }
 0x366   : > { %1557 = vst.msk [vmem:[%s2418_s19 + $0x70] sm:$0xff] %vm1542_vm13, %v2011_v0 }
 0x367 PF: > { %s12_s9 = sadd.s32 1, %s2018_s9  }
 0x368   : > { %p9_p4 = scmp.ge.s32.totalorder %s12_s9, 4  }
 0x36a   :  { %11 = sbr.rel (!%p9_p4) target bundleno = 1 (0x1), region = 58 }

</bundles_post_ra>
